<compile_context>
chip_gen: v6e
topology: v6e:2x2x1
jax: 0.10.0
libtpu: 0.0.40
codegen_flags: <defaults>
</compile_context>

<pallas_src>
import math
import functools

import jax
import jax.numpy as jnp
from jax.experimental import pallas as pl
from jax.experimental.pallas import tpu as pltpu


_LN_EPS = 1e-5
_TM_LINEAR = 512        # row tile for plain linears / proj+LN
_TM_FFN = 256           # row tile for the fused FFN kernel
_TQ_ATTN = 256          # query tile for attention
_TN_CAP = 1024          # col tile for wide outputs (vocab projection)
_TF_CAP = 512           # dim_feedforward tile
_VMEM_LIMIT = 64 * 1024 * 1024


def _cparams(*sems):
    return pltpu.CompilerParams(dimension_semantics=sems,
                                vmem_limit_bytes=_VMEM_LIMIT)


# ------------------------------ tiling helpers ------------------------------

def _tile(m, cap, quantum):
    """Largest multiple-of-`quantum` divisor of m that is <= cap (else full m)."""
    if m <= cap:
        return m
    for t in range(cap - cap % quantum, quantum - 1, -quantum):
        if m % t == 0:
            return t
    # TODO(synk): pad M/N (or masked-tail grid) instead of one full-size block.
    return m


def _row_tile(m, cap):
    return _tile(m, cap, 8)


def _col_tile(n, cap):
    return _tile(n, cap, 128)


# ----------------------------- Pallas kernels ------------------------------

def _layernorm(x, gamma, beta, eps):
    mean = jnp.mean(x, axis=-1, keepdims=True)
    ctr = x - mean
    var = jnp.mean(ctr * ctr, axis=-1, keepdims=True)
    return ctr * jax.lax.rsqrt(var + eps) * gamma + beta


def _linear_kernel(x_ref, w_ref, b_ref, o_ref, *, activation):
    """(tm, K) @ (K, tn) + (1, tn); bf16 MXU operands, f32 accumulate."""
    y = jnp.dot(x_ref[...].astype(jnp.bfloat16), w_ref[...],
                preferred_element_type=jnp.float32)
    y = y + b_ref[...]
    if activation == "relu":
        y = jnp.maximum(y, 0.0)
    o_ref[...] = y.astype(o_ref.dtype)


def linear(x, w, b, activation=None, out_dtype=jnp.float32, col_major_grid=False):
    """x: (M, K), w: (K, N) bf16 (pre-cast), b: (N,) f32 -> (M, N) out_dtype."""
    M, K = x.shape
    N = w.shape[1]
    tm = _row_tile(M, _TM_LINEAR)
    tn = _col_tile(N, _TN_CAP)
    kern = functools.partial(_linear_kernel, activation=activation)
    if col_major_grid:
        # N outermost: each (K, tn) weight block is DMA'd from HBM once and stays
        # resident across the inner M loop (only the small x tiles are re-read).
        grid = (N // tn, M // tm)
        in_specs = [pl.BlockSpec((tm, K), lambda j, i: (i, 0)),
                    pl.BlockSpec((K, tn), lambda j, i: (0, j)),
                    pl.BlockSpec((1, tn), lambda j, i: (0, j))]
        out_spec = pl.BlockSpec((tm, tn), lambda j, i: (i, j))
    else:
        grid = (M // tm, N // tn)
        in_specs = [pl.BlockSpec((tm, K), lambda i, j: (i, 0)),
                    pl.BlockSpec((K, tn), lambda i, j: (0, j)),
                    pl.BlockSpec((1, tn), lambda i, j: (0, j))]
        out_spec = pl.BlockSpec((tm, tn), lambda i, j: (i, j))
    return pl.pallas_call(
        kern,
        out_shape=jax.ShapeDtypeStruct((M, N), out_dtype),
        grid=grid,
        in_specs=in_specs,
        out_specs=out_spec,
        compiler_params=_cparams("parallel", "parallel"),
    )(x, w, b.reshape(1, N))


def _qkv_linear_kernel(x_ref, w_ref, b_ref, q_ref, kv_ref, *, d_model):
    """Fused Q|K|V projection: one MXU matmul, two bf16 outputs (q and k|v)."""
    y = jnp.dot(x_ref[...].astype(jnp.bfloat16), w_ref[...],
                preferred_element_type=jnp.float32) + b_ref[...]
    q_ref[...] = y[:, :d_model].astype(q_ref.dtype)
    kv_ref[...] = y[:, d_model:].astype(kv_ref.dtype)


def qkv_linear(x, w, b):
    """x: (M, D) f32, w: (D, 3D) bf16 -> (q (M, D) bf16, kv (M, 2D) bf16)."""
    M, D = x.shape
    tm = _row_tile(M, _TM_LINEAR)
    return pl.pallas_call(
        functools.partial(_qkv_linear_kernel, d_model=D),
        out_shape=(jax.ShapeDtypeStruct((M, D), jnp.bfloat16),
                   jax.ShapeDtypeStruct((M, 2 * D), jnp.bfloat16)),
        grid=(M // tm,),
        in_specs=[pl.BlockSpec((tm, D), lambda i: (i, 0)),
                  pl.BlockSpec((D, 3 * D), lambda i: (0, 0)),
                  pl.BlockSpec((1, 3 * D), lambda i: (0, 0))],
        out_specs=(pl.BlockSpec((tm, D), lambda i: (i, 0)),
                   pl.BlockSpec((tm, 2 * D), lambda i: (i, 0))),
        compiler_params=_cparams("parallel"),
    )(x, w, b.reshape(1, 3 * D))


def _proj_add_ln_kernel(a_ref, w_ref, b_ref, r_ref, g_ref, be_ref, o_ref, *, eps):
    """LayerNorm( (a @ Wo + bo) + residual )  -- fused attn output path."""
    y = jnp.dot(a_ref[...].astype(jnp.bfloat16), w_ref[...],
                preferred_element_type=jnp.float32) + b_ref[...]
    o_ref[...] = _layernorm(y + r_ref[...], g_ref[...], be_ref[...], eps)


def proj_add_layernorm(a, w, b, resid, gamma, beta, eps=_LN_EPS):
    M, K = a.shape
    D = w.shape[1]
    tm = _row_tile(M, _TM_LINEAR)
    return pl.pallas_call(
        functools.partial(_proj_add_ln_kernel, eps=eps),
        out_shape=jax.ShapeDtypeStruct((M, D), jnp.float32),
        grid=(M // tm,),
        in_specs=[
            pl.BlockSpec((tm, K), lambda i: (i, 0)),
            pl.BlockSpec((K, D), lambda i: (0, 0)),
            pl.BlockSpec((1, D), lambda i: (0, 0)),
            pl.BlockSpec((tm, D), lambda i: (i, 0)),
            pl.BlockSpec((1, D), lambda i: (0, 0)),
            pl.BlockSpec((1, D), lambda i: (0, 0)),
        ],
        out_specs=pl.BlockSpec((tm, D), lambda i: (i, 0)),
        compiler_params=_cparams("parallel"),
    )(a, w, b.reshape(1, D), resid, gamma.reshape(1, D), beta.reshape(1, D))


def _ffn_add_ln_kernel(x_ref, w1_ref, b1_ref, w2_ref, b2_ref, g_ref, be_ref,
                       o_ref, acc_ref, *, eps):
    """LayerNorm( x + W2 @ relu(W1 @ x + b1) + b2 ), FF axis tiled + accumulated."""
    k = pl.program_id(1)

    @pl.when(k == 0)
    def _():
        acc_ref[...] = jnp.zeros_like(acc_ref)

    x = x_ref[...]
    h = jnp.dot(x.astype(jnp.bfloat16), w1_ref[...],
                preferred_element_type=jnp.float32) + b1_ref[...]
    h = jnp.maximum(h, 0.0)                      # ReLU is elementwise per FF chunk
    acc_ref[...] += jnp.dot(h.astype(jnp.bfloat16), w2_ref[...],
                            preferred_element_type=jnp.float32)

    @pl.when(k == pl.num_programs(1) - 1)
    def _():
        y = acc_ref[...] + b2_ref[...] + x
        o_ref[...] = _layernorm(y, g_ref[...], be_ref[...], eps)


def ffn_add_layernorm(x, w1, b1, w2, b2, gamma, beta, eps=_LN_EPS):
    M, D = x.shape
    FF = w1.shape[1]
    tm = _row_tile(M, _TM_FFN)
    tf = _col_tile(FF, _TF_CAP)
    return pl.pallas_call(
        functools.partial(_ffn_add_ln_kernel, eps=eps),
        out_shape=jax.ShapeDtypeStruct((M, D), jnp.float32),
        grid=(M // tm, FF // tf),
        in_specs=[
            pl.BlockSpec((tm, D), lambda i, k: (i, 0)),
            pl.BlockSpec((D, tf), lambda i, k: (0, k)),
            pl.BlockSpec((1, tf), lambda i, k: (0, k)),
            pl.BlockSpec((tf, D), lambda i, k: (k, 0)),
            pl.BlockSpec((1, D), lambda i, k: (0, 0)),
            pl.BlockSpec((1, D), lambda i, k: (0, 0)),
            pl.BlockSpec((1, D), lambda i, k: (0, 0)),
        ],
        out_specs=pl.BlockSpec((tm, D), lambda i, k: (i, 0)),
        scratch_shapes=[pltpu.VMEM((tm, D), jnp.float32)],
        compiler_params=_cparams("parallel", "arbitrary"),
    )(x, w1, b1.reshape(1, FF), w2, b2.reshape(1, D),
      gamma.reshape(1, D), beta.reshape(1, D))


def _attention_kernel(q_ref, kv_ref, o_ref, *, nhead, dh, scale, causal, tq):
    """All-heads attention for one (batch, q-tile) grid step; lane-dense output."""
    D = nhead * dh
    q_all = q_ref[...]                          # (tq, D)  bf16
    kv = kv_ref[...]                            # (Sk, 2D) bf16
    Sk = kv.shape[0]
    if causal:
        q0 = pl.program_id(1) * tq              # global query offset of this tile
        row = jax.lax.broadcasted_iota(jnp.int32, (tq, Sk), 0) + q0
        col = jax.lax.broadcasted_iota(jnp.int32, (tq, Sk), 1)
        neg = jnp.where(col > row, -1e9, 0.0).astype(jnp.float32)
    for h in range(nhead):
        q = q_all[:, h * dh:(h + 1) * dh]
        k = kv[:, h * dh:(h + 1) * dh]
        v = kv[:, D + h * dh:D + (h + 1) * dh]
        # contract last dims directly (no explicit k.T / XLU transpose)
        s = jax.lax.dot_general(q, k, (((1,), (1,)), ((), ())),
                                preferred_element_type=jnp.float32) * scale
        if causal:
            s = s + neg
        m = jnp.max(s, axis=-1, keepdims=True)
        p = jnp.exp(s - m)
        denom = jnp.sum(p, axis=-1, keepdims=True)
        p = p * pl.reciprocal(denom, approx=True)
        out_h = jnp.dot(p.astype(jnp.bfloat16), v,
                        preferred_element_type=jnp.float32)
        # direct per-head store into the lane slice (no jnp.concatenate copy)
        o_ref[:, h * dh:(h + 1) * dh] = out_h.astype(o_ref.dtype)


def attention(q, kv, nhead, causal):
    """q: (B, Sq, D) bf16, kv: (B, Sk, 2D) bf16 -> (B, Sq, D) bf16."""
    B, Sq, D = q.shape
    Sk = kv.shape[1]
    dh = D // nhead
    tq = _row_tile(Sq, _TQ_ATTN)
    return pl.pallas_call(
        functools.partial(_attention_kernel, nhead=nhead, dh=dh,
                          scale=1.0 / math.sqrt(dh), causal=causal, tq=tq),
        out_shape=jax.ShapeDtypeStruct((B, Sq, D), jnp.bfloat16),
        grid=(B, Sq // tq),
        in_specs=[pl.BlockSpec((None, tq, D), lambda b, qi: (b, qi, 0)),
                  pl.BlockSpec((None, Sk, 2 * D), lambda b, qi: (b, 0, 0))],
        out_specs=pl.BlockSpec((None, tq, D), lambda b, qi: (b, qi, 0)),
        compiler_params=_cparams("parallel", "parallel"),
    )(q, kv)


# --------------------------- model building blocks --------------------------

def encoder_layer(p, x, nhead):
    """x: (B, S, D) f32 -> (B, S, D) f32.  Post-LN TransformerEncoderLayer (eval)."""
    B, S, D = x.shape
    x2 = x.reshape(B * S, D)
    q, kv = qkv_linear(x2, p["self_attn"]["w_qkv"], p["self_attn"]["b_qkv"])
    a = attention(q.reshape(B, S, D), kv.reshape(B, S, 2 * D), nhead, causal=False)
    x2 = proj_add_layernorm(a.reshape(B * S, D), p["self_attn"]["wo"],
                            p["self_attn"]["bo"], x2, p["ln1_g"], p["ln1_b"])
    x2 = ffn_add_layernorm(x2, p["ff_w1"], p["ff_b1"], p["ff_w2"], p["ff_b2"],
                           p["ln2_g"], p["ln2_b"])
    return x2.reshape(B, S, D)


def decoder_layer(p, x, memory, nhead):
    """x: (B, St, D), memory: (B, Ss, D) -> (B, St, D)."""
    B, St, D = x.shape
    Ss = memory.shape[1]
    x2 = x.reshape(B * St, D)

    # masked self-attention
    q, kv = qkv_linear(x2, p["self_attn"]["w_qkv"], p["self_attn"]["b_qkv"])
    a = attention(q.reshape(B, St, D), kv.reshape(B, St, 2 * D), nhead, causal=True)
    x2 = proj_add_layernorm(a.reshape(B * St, D), p["self_attn"]["wo"],
                            p["self_attn"]["bo"], x2, p["ln1_g"], p["ln1_b"])

    # cross-attention over encoder memory (memory_mask=None -> no mask)
    q = linear(x2, p["cross_attn"]["wq"], p["cross_attn"]["bq"],
               out_dtype=jnp.bfloat16)
    kv = linear(memory.reshape(B * Ss, D), p["cross_attn"]["w_kv"],
                p["cross_attn"]["b_kv"], out_dtype=jnp.bfloat16)
    a2 = attention(q.reshape(B, St, D), kv.reshape(B, Ss, 2 * D), nhead,
                   causal=False)
    x2 = proj_add_layernorm(a2.reshape(B * St, D), p["cross_attn"]["wo"],
                            p["cross_attn"]["bo"], x2, p["ln2_g"], p["ln2_b"])

    # feed-forward
    x2 = ffn_add_layernorm(x2, p["ff_w1"], p["ff_b1"], p["ff_w2"], p["ff_b2"],
                           p["ln3_g"], p["ln3_b"])
    return x2.reshape(B, St, D)


def positional_encoding(max_len, d_model):
    pos = jnp.arange(max_len, dtype=jnp.float32)[:, None]
    div = jnp.exp(jnp.arange(0, d_model, 2, dtype=jnp.float32)
                  * (-math.log(10000.0) / d_model))
    pe = jnp.zeros((max_len, d_model), jnp.float32)
    pe = pe.at[:, 0::2].set(jnp.sin(pos * div))
    pe = pe.at[:, 1::2].set(jnp.cos(pos * div))
    return pe                                       # (max_len, d_model)


def transformer_nmt_forward(params, src_ids, tgt_ids, cfg):
    """src_ids/tgt_ids: (seq_len, batch) int32 -> logits (tgt_len, batch, V)."""
    D, nhead = cfg["d_model"], cfg["nhead"]
    S_src, B = src_ids.shape
    S_tgt = tgt_ids.shape[0]
    pe = params["pe"]
    scale = math.sqrt(D)

    # Embedding lookup + scale + positional encoding (glue; gather stays in JAX).
    # Token ids transposed to batch-major so all kernel activations are (B, S, D).
    src = params["src_emb"][src_ids.T] * scale + pe[:S_src][None, :, :]
    tgt = params["tgt_emb"][tgt_ids.T] * scale + pe[:S_tgt][None, :, :]

    memory = src
    for lp in params["enc_layers"]:
        memory = encoder_layer(lp, memory, nhead)

    out = tgt
    for lp in params["dec_layers"]:
        out = decoder_layer(lp, out, memory, nhead)

    # Transpose the SMALL (B, S_tgt, D) activation to (seq, batch) order so the
    # vocab projection writes the PyTorch (S_tgt, B, V) layout directly — no full
    # logits-sized XLA transpose.
    out_sb = jnp.transpose(out, (1, 0, 2)).reshape(S_tgt * B, D)
    logits = linear(out_sb, params["out_w"], params["out_b"], col_major_grid=True)
    return logits.reshape(S_tgt, B, cfg["tgt_vocab"])


# ------------------------------- param init --------------------------------

def init_params(key, cfg):
    D, FF = cfg["d_model"], cfg["dim_feedforward"]
    keys = iter(jax.random.split(key, 512))
    bf = jnp.bfloat16

    def u(shape, scale=0.1, dtype=jnp.float32):
        w = jax.random.uniform(next(keys), shape, jnp.float32, -scale, scale)
        return w.astype(dtype)   # matmul weights pre-cast to bf16 ONCE here

    def mha_self():
        return {"w_qkv": u((D, 3 * D), dtype=bf), "b_qkv": jnp.zeros((3 * D,)),
                "wo": u((D, D), dtype=bf), "bo": jnp.zeros((D,))}

    def mha_cross():
        return {"wq": u((D, D), dtype=bf), "bq": jnp.zeros((D,)),
                "w_kv": u((D, 2 * D), dtype=bf), "b_kv": jnp.zeros((2 * D,)),
                "wo": u((D, D), dtype=bf), "bo": jnp.zeros((D,))}

    def enc():
        return {"self_attn": mha_self(),
                "ff_w1": u((D, FF), dtype=bf), "ff_b1": jnp.zeros((FF,)),
                "ff_w2": u((FF, D), dtype=bf), "ff_b2": jnp.zeros((D,)),
                "ln1_g": jnp.ones((D,)), "ln1_b": jnp.zeros((D,)),
                "ln2_g": jnp.ones((D,)), "ln2_b": jnp.zeros((D,))}

    def dec():
        return {"self_attn": mha_self(), "cross_attn": mha_cross(),
                "ff_w1": u((D, FF), dtype=bf), "ff_b1": jnp.zeros((FF,)),
                "ff_w2": u((FF, D), dtype=bf), "ff_b2": jnp.zeros((D,)),
                "ln1_g": jnp.ones((D,)), "ln1_b": jnp.zeros((D,)),
                "ln2_g": jnp.ones((D,)), "ln2_b": jnp.zeros((D,)),
                "ln3_g": jnp.ones((D,)), "ln3_b": jnp.zeros((D,))}

    return {
        "src_emb": u((cfg["src_vocab"], D)),      # uniform(-0.1, 0.1) like init_weights
        "tgt_emb": u((cfg["tgt_vocab"], D)),
        "pe": positional_encoding(cfg["max_len"], D),
        "enc_layers": [enc() for _ in range(cfg["num_encoder_layers"])],
        "dec_layers": [dec() for _ in range(cfg["num_decoder_layers"])],
        "out_w": u((D, cfg["tgt_vocab"]), dtype=bf),
        "out_b": jnp.zeros((cfg["tgt_vocab"],)),
    }


# ----------------------------------- main -----------------------------------

if __name__ == "__main__":
    cfg = dict(src_vocab=128, tgt_vocab=128, d_model=32, nhead=4,
               num_encoder_layers=2, num_decoder_layers=2,
               dim_feedforward=64, max_len=64)
    S_src, S_tgt, B = 8, 8, 2

    key = jax.random.PRNGKey(0)
    k_params, k_src, k_tgt = jax.random.split(key, 3)
    params = init_params(k_params, cfg)

    src_ids = jax.random.randint(k_src, (S_src, B), 0, cfg["src_vocab"], jnp.int32)
    tgt_ids = jax.random.randint(k_tgt, (S_tgt, B), 0, cfg["tgt_vocab"], jnp.int32)

    fwd = jax.jit(functools.partial(transformer_nmt_forward, cfg=cfg))
    logits = fwd(params, src_ids, tgt_ids)
    jax.block_until_ready(logits)

    assert logits.shape == (S_tgt, B, cfg["tgt_vocab"])
    assert bool(jnp.all(jnp.isfinite(logits.astype(jnp.float32))))
    print("KERNEL_OK")
</pallas_src>

<mosaic_0001>
module attributes {stable_mosaic.version = 11 : i64} {
  func.func @_qkv_linear_kernel(%arg0: i32, %arg1: memref<16x32xf32, #tpu.memory_space<vmem>>, %arg2: memref<32x96xbf16, #tpu.memory_space<vmem>>, %arg3: memref<1x96xf32, #tpu.memory_space<vmem>>, %arg4: memref<16x32xbf16, #tpu.memory_space<vmem>>, %arg5: memref<16x64xbf16, #tpu.memory_space<vmem>>) attributes {dimension_semantics = [#tpu.dimension_semantics<parallel>], iteration_bounds = array<i64: 1>, scalar_prefetch = 0 : i64, scratch_operands = 0 : i64, tpu.core_type = #tpu.core_type<tc>, window_params = [{transform_indices = @transform_0, window_bounds = array<i64: 16, 32>}, {pipeline_mode = #tpu.pipeline_mode<synchronous>, transform_indices = @transform_1, window_bounds = array<i64: 32, 96>}, {pipeline_mode = #tpu.pipeline_mode<synchronous>, transform_indices = @transform_2, window_bounds = array<i64: 1, 96>}, {transform_indices = @transform_3, window_bounds = array<i64: 16, 32>}, {transform_indices = @transform_4, window_bounds = array<i64: 16, 64>}]} {
    %c0 = arith.constant 0 : index
    %c0_0 = arith.constant 0 : index
    %0 = vector.load %arg1[%c0, %c0_0] : memref<16x32xf32, #tpu.memory_space<vmem>>, vector<16x32xf32>
    %1 = arith.truncf %0 : vector<16x32xf32> to vector<16x32xbf16>
    %c0_1 = arith.constant 0 : index
    %c0_2 = arith.constant 0 : index
    %2 = vector.load %arg2[%c0_1, %c0_2] : memref<32x96xbf16, #tpu.memory_space<vmem>>, vector<32x96xbf16>
    %cst = arith.constant dense<0.000000e+00> : vector<16x96xf32>
    %3 = tpu.matmul %1, %2, %cst {dimension_numbers = #tpu.dot_dimension_numbers<[1], [0], [0], [1], [0, 0, 1, 1], [], []>} : vector<16x32xbf16>, vector<32x96xbf16>, vector<16x96xf32> -> vector<16x96xf32>
    %c0_3 = arith.constant 0 : index
    %c0_4 = arith.constant 0 : index
    %4 = vector.load %arg3[%c0_3, %c0_4] : memref<1x96xf32, #tpu.memory_space<vmem>>, vector<1x96xf32>
    %5 = vector.broadcast %4 : vector<1x96xf32> to vector<16x96xf32>
    %6 = arith.addf %3, %5 : vector<16x96xf32>
    %7 = vector.extract_strided_slice %6 {offsets = [0, 0], sizes = [16, 32], strides = [1, 1]} : vector<16x96xf32> to vector<16x32xf32>
    %8 = arith.truncf %7 : vector<16x32xf32> to vector<16x32xbf16>
    %c0_5 = arith.constant 0 : index
    %c0_6 = arith.constant 0 : index
    %9 = vector.load %arg4[%c0_5, %c0_6] : memref<16x32xbf16, #tpu.memory_space<vmem>>, vector<16x32xbf16>
    tpu.vector_store %arg4[%c0_5, %c0_6], %8 {strides = array<i32>} : memref<16x32xbf16, #tpu.memory_space<vmem>>, vector<16x32xbf16>,
    %10 = vector.extract_strided_slice %6 {offsets = [0, 32], sizes = [16, 64], strides = [1, 1]} : vector<16x96xf32> to vector<16x64xf32>
    %11 = arith.truncf %10 : vector<16x64xf32> to vector<16x64xbf16>
    %c0_7 = arith.constant 0 : index
    %c0_8 = arith.constant 0 : index
    %12 = vector.load %arg5[%c0_7, %c0_8] : memref<16x64xbf16, #tpu.memory_space<vmem>>, vector<16x64xbf16>
    tpu.vector_store %arg5[%c0_7, %c0_8], %11 {strides = array<i32>} : memref<16x64xbf16, #tpu.memory_space<vmem>>, vector<16x64xbf16>,
    return
  }
  func.func @transform_0(%arg0: i32) -> (i32, i32) {
    %c0_i32 = arith.constant 0 : i32
    %c0_i32_0 = arith.constant 0 : i32
    return %arg0, %c0_i32 : i32, i32
  }
  func.func @transform_1(%arg0: i32) -> (i32, i32) {
    %c0_i32 = arith.constant 0 : i32
    %c0_i32_0 = arith.constant 0 : i32
    %c0_i32_1 = arith.constant 0 : i32
    return %c0_i32, %c0_i32_0 : i32, i32
  }
  func.func @transform_2(%arg0: i32) -> (i32, i32) {
    %c0_i32 = arith.constant 0 : i32
    %c0_i32_0 = arith.constant 0 : i32
    %c0_i32_1 = arith.constant 0 : i32
    return %c0_i32, %c0_i32_0 : i32, i32
  }
  func.func @transform_3(%arg0: i32) -> (i32, i32) {
    %c0_i32 = arith.constant 0 : i32
    %c0_i32_0 = arith.constant 0 : i32
    return %arg0, %c0_i32 : i32, i32
  }
  func.func @transform_4(%arg0: i32) -> (i32, i32) {
    %c0_i32 = arith.constant 0 : i32
    %c0_i32_0 = arith.constant 0 : i32
    return %arg0, %c0_i32 : i32, i32
  }
}

module attributes {stable_mosaic.version = 11 : i64} {
  func.func @_proj_add_ln_kernel(%arg0: i32, %arg1: memref<16x32xbf16, #tpu.memory_space<vmem>>, %arg2: memref<32x32xbf16, #tpu.memory_space<vmem>>, %arg3: memref<1x32xf32, #tpu.memory_space<vmem>>, %arg4: memref<16x32xf32, #tpu.memory_space<vmem>>, %arg5: memref<1x32xf32, #tpu.memory_space<vmem>>, %arg6: memref<1x32xf32, #tpu.memory_space<vmem>>, %arg7: memref<16x32xf32, #tpu.memory_space<vmem>>) attributes {dimension_semantics = [#tpu.dimension_semantics<parallel>], iteration_bounds = array<i64: 1>, scalar_prefetch = 0 : i64, scratch_operands = 0 : i64, tpu.core_type = #tpu.core_type<tc>, window_params = [{transform_indices = @transform_0, window_bounds = array<i64: 16, 32>}, {pipeline_mode = #tpu.pipeline_mode<synchronous>, transform_indices = @transform_1, window_bounds = array<i64: 32, 32>}, {pipeline_mode = #tpu.pipeline_mode<synchronous>, transform_indices = @transform_2, window_bounds = array<i64: 1, 32>}, {transform_indices = @transform_3, window_bounds = array<i64: 16, 32>}, {pipeline_mode = #tpu.pipeline_mode<synchronous>, transform_indices = @transform_4, window_bounds = array<i64: 1, 32>}, {pipeline_mode = #tpu.pipeline_mode<synchronous>, transform_indices = @transform_5, window_bounds = array<i64: 1, 32>}, {transform_indices = @transform_6, window_bounds = array<i64: 16, 32>}]} {
    %c0 = arith.constant 0 : index
    %c0_0 = arith.constant 0 : index
    %0 = vector.load %arg1[%c0, %c0_0] : memref<16x32xbf16, #tpu.memory_space<vmem>>, vector<16x32xbf16>
    %c0_1 = arith.constant 0 : index
    %c0_2 = arith.constant 0 : index
    %1 = vector.load %arg2[%c0_1, %c0_2] : memref<32x32xbf16, #tpu.memory_space<vmem>>, vector<32x32xbf16>
    %cst = arith.constant dense<0.000000e+00> : vector<16x32xf32>
    %2 = tpu.matmul %0, %1, %cst {dimension_numbers = #tpu.dot_dimension_numbers<[1], [0], [0], [1], [0, 0, 1, 1], [], []>} : vector<16x32xbf16>, vector<32x32xbf16>, vector<16x32xf32> -> vector<16x32xf32>
    %c0_3 = arith.constant 0 : index
    %c0_4 = arith.constant 0 : index
    %3 = vector.load %arg3[%c0_3, %c0_4] : memref<1x32xf32, #tpu.memory_space<vmem>>, vector<1x32xf32>
    %4 = vector.broadcast %3 : vector<1x32xf32> to vector<16x32xf32>
    %5 = arith.addf %2, %4 : vector<16x32xf32>
    %c0_5 = arith.constant 0 : index
    %c0_6 = arith.constant 0 : index
    %6 = vector.load %arg4[%c0_5, %c0_6] : memref<16x32xf32, #tpu.memory_space<vmem>>, vector<16x32xf32>
    %7 = arith.addf %5, %6 : vector<16x32xf32>
    %c0_7 = arith.constant 0 : index
    %c0_8 = arith.constant 0 : index
    %8 = vector.load %arg5[%c0_7, %c0_8] : memref<1x32xf32, #tpu.memory_space<vmem>>, vector<1x32xf32>
    %c0_9 = arith.constant 0 : index
    %c0_10 = arith.constant 0 : index
    %9 = vector.load %arg6[%c0_9, %c0_10] : memref<1x32xf32, #tpu.memory_space<vmem>>, vector<1x32xf32>
    %cst_11 = arith.constant dense<0.000000e+00> : vector<16xf32>
    %10 = vector.multi_reduction <add>, %7, %cst_11 [1] : vector<16x32xf32> to vector<16xf32>
    %11 = vector.shape_cast %10 : vector<16xf32> to vector<16x1xf32>
    %cst_12 = arith.constant 3.200000e+01 : f32
    %12 = vector.broadcast %cst_12 : f32 to vector<16x1xf32>
    %13 = arith.divf %11, %12 : vector<16x1xf32>
    %14 = vector.broadcast %13 : vector<16x1xf32> to vector<16x32xf32>
    %15 = arith.subf %7, %14 : vector<16x32xf32>
    %16 = arith.mulf %15, %15 : vector<16x32xf32>
    %cst_13 = arith.constant dense<0.000000e+00> : vector<16xf32>
    %17 = vector.multi_reduction <add>, %16, %cst_13 [1] : vector<16x32xf32> to vector<16xf32>
    %18 = vector.shape_cast %17 : vector<16xf32> to vector<16x1xf32>
    %cst_14 = arith.constant 3.200000e+01 : f32
    %19 = vector.broadcast %cst_14 : f32 to vector<16x1xf32>
    %20 = arith.divf %18, %19 : vector<16x1xf32>
    %cst_15 = arith.constant 9.99999974E-6 : f32
    %21 = vector.broadcast %cst_15 : f32 to vector<16x1xf32>
    %22 = arith.addf %20, %21 : vector<16x1xf32>
    %23 = math.rsqrt %22 : vector<16x1xf32>
    %24 = vector.broadcast %23 : vector<16x1xf32> to vector<16x32xf32>
    %25 = arith.mulf %15, %24 : vector<16x32xf32>
    %26 = vector.broadcast %8 : vector<1x32xf32> to vector<16x32xf32>
    %27 = arith.mulf %25, %26 : vector<16x32xf32>
    %28 = vector.broadcast %9 : vector<1x32xf32> to vector<16x32xf32>
    %29 = arith.addf %27, %28 : vector<16x32xf32>
    %c0_16 = arith.constant 0 : index
    %c0_17 = arith.constant 0 : index
    %30 = vector.load %arg7[%c0_16, %c0_17] : memref<16x32xf32, #tpu.memory_space<vmem>>, vector<16x32xf32>
    tpu.vector_store %arg7[%c0_16, %c0_17], %29 {strides = array<i32>} : memref<16x32xf32, #tpu.memory_space<vmem>>, vector<16x32xf32>,
    return
  }
  func.func @transform_0(%arg0: i32) -> (i32, i32) {
    %c0_i32 = arith.constant 0 : i32
    %c0_i32_0 = arith.constant 0 : i32
    return %arg0, %c0_i32 : i32, i32
  }
  func.func @transform_1(%arg0: i32) -> (i32, i32) {
    %c0_i32 = arith.constant 0 : i32
    %c0_i32_0 = arith.constant 0 : i32
    %c0_i32_1 = arith.constant 0 : i32
    return %c0_i32, %c0_i32_0 : i32, i32
  }
  func.func @transform_2(%arg0: i32) -> (i32, i32) {
    %c0_i32 = arith.constant 0 : i32
    %c0_i32_0 = arith.constant 0 : i32
    %c0_i32_1 = arith.constant 0 : i32
    return %c0_i32, %c0_i32_0 : i32, i32
  }
  func.func @transform_3(%arg0: i32) -> (i32, i32) {
    %c0_i32 = arith.constant 0 : i32
    %c0_i32_0 = arith.constant 0 : i32
    return %arg0, %c0_i32 : i32, i32
  }
  func.func @transform_4(%arg0: i32) -> (i32, i32) {
    %c0_i32 = arith.constant 0 : i32
    %c0_i32_0 = arith.constant 0 : i32
    %c0_i32_1 = arith.constant 0 : i32
    return %c0_i32, %c0_i32_0 : i32, i32
  }
  func.func @transform_5(%arg0: i32) -> (i32, i32) {
    %c0_i32 = arith.constant 0 : i32
    %c0_i32_0 = arith.constant 0 : i32
    %c0_i32_1 = arith.constant 0 : i32
    return %c0_i32, %c0_i32_0 : i32, i32
  }
  func.func @transform_6(%arg0: i32) -> (i32, i32) {
    %c0_i32 = arith.constant 0 : i32
    %c0_i32_0 = arith.constant 0 : i32
    return %arg0, %c0_i32 : i32, i32
  }
}

module attributes {stable_mosaic.version = 11 : i64} {
  func.func @_attention_kernel(%arg0: i32, %arg1: i32, %arg2: memref<1x8x32xbf16, #tpu.memory_space<vmem>>, %arg3: memref<1x8x64xbf16, #tpu.memory_space<vmem>>, %arg4: memref<1x8x32xbf16, #tpu.memory_space<vmem>>) attributes {dimension_semantics = [#tpu.dimension_semantics<parallel>, #tpu.dimension_semantics<parallel>], iteration_bounds = array<i64: 2, 1>, scalar_prefetch = 0 : i64, scratch_operands = 0 : i64, tpu.core_type = #tpu.core_type<tc>, window_params = [{transform_indices = @transform_0, window_bounds = array<i64: 1, 8, 32>}, {transform_indices = @transform_1, window_bounds = array<i64: 1, 8, 64>}, {transform_indices = @transform_2, window_bounds = array<i64: 1, 8, 32>}]} {
    %c0 = arith.constant 0 : index
    %c0_0 = arith.constant 0 : index
    %c0_1 = arith.constant 0 : index
    %0 = vector.load %arg2[%c0, %c0_0, %c0_1] : memref<1x8x32xbf16, #tpu.memory_space<vmem>>, vector<1x8x32xbf16>
    %1 = vector.shape_cast %0 : vector<1x8x32xbf16> to vector<8x32xbf16>
    %c0_2 = arith.constant 0 : index
    %c0_3 = arith.constant 0 : index
    %c0_4 = arith.constant 0 : index
    %2 = vector.load %arg3[%c0_2, %c0_3, %c0_4] : memref<1x8x64xbf16, #tpu.memory_space<vmem>>, vector<1x8x64xbf16>
    %3 = vector.shape_cast %2 : vector<1x8x64xbf16> to vector<8x64xbf16>
    %4 = vector.extract_strided_slice %1 {offsets = [0, 0], sizes = [8, 8], strides = [1, 1]} : vector<8x32xbf16> to vector<8x8xbf16>
    %5 = vector.extract_strided_slice %3 {offsets = [0, 0], sizes = [8, 8], strides = [1, 1]} : vector<8x64xbf16> to vector<8x8xbf16>
    %6 = vector.extract_strided_slice %3 {offsets = [0, 32], sizes = [8, 8], strides = [1, 1]} : vector<8x64xbf16> to vector<8x8xbf16>
    %cst = arith.constant dense<0.000000e+00> : vector<8x8xf32>
    %7 = tpu.matmul %4, %5, %cst {dimension_numbers = #tpu.dot_dimension_numbers<[1], [1], [0], [0], [0, 0, 1, 0], [], []>} : vector<8x8xbf16>, vector<8x8xbf16>, vector<8x8xf32> -> vector<8x8xf32>
    %cst_5 = arith.constant 0.353553385 : f32
    %8 = vector.broadcast %cst_5 : f32 to vector<8x8xf32>
    %9 = arith.mulf %7, %8 : vector<8x8xf32>
    %cst_6 = arith.constant dense<0xFF800000> : vector<8xf32>
    %10 = vector.multi_reduction <maximumf>, %9, %cst_6 [1] : vector<8x8xf32> to vector<8xf32>
    %11 = vector.shape_cast %10 : vector<8xf32> to vector<8x1xf32>
    %12 = vector.broadcast %11 : vector<8x1xf32> to vector<8x8xf32>
    %13 = arith.subf %9, %12 : vector<8x8xf32>
    %14 = math.exp %13 : vector<8x8xf32>
    %cst_7 = arith.constant dense<0.000000e+00> : vector<8xf32>
    %15 = vector.multi_reduction <add>, %14, %cst_7 [1] : vector<8x8xf32> to vector<8xf32>
    %16 = vector.shape_cast %15 : vector<8xf32> to vector<8x1xf32>
    %17 = tpu.reciprocal %16 {approx = true} : vector<8x1xf32> -> vector<8x1xf32>
    %18 = vector.broadcast %17 : vector<8x1xf32> to vector<8x8xf32>
    %19 = arith.mulf %14, %18 : vector<8x8xf32>
    %20 = arith.truncf %19 : vector<8x8xf32> to vector<8x8xbf16>
    %cst_8 = arith.constant dense<0.000000e+00> : vector<8x8xf32>
    %21 = tpu.matmul %20, %6, %cst_8 {dimension_numbers = #tpu.dot_dimension_numbers<[1], [0], [0], [1], [0, 0, 1, 1], [], []>} : vector<8x8xbf16>, vector<8x8xbf16>, vector<8x8xf32> -> vector<8x8xf32>
    %22 = arith.truncf %21 : vector<8x8xf32> to vector<8x8xbf16>
    %c0_9 = arith.constant 0 : index
    %c0_10 = arith.constant 0 : index
    %c0_11 = arith.constant 0 : index
    %23 = vector.load %arg4[%c0_9, %c0_10, %c0_11] : memref<1x8x32xbf16, #tpu.memory_space<vmem>>, vector<1x8x8xbf16>
    %24 = vector.shape_cast %23 : vector<1x8x8xbf16> to vector<8x8xbf16>
    %25 = vector.shape_cast %22 : vector<8x8xbf16> to vector<1x8x8xbf16>
    tpu.vector_store %arg4[%c0_9, %c0_10, %c0_11], %25 {strides = array<i32>} : memref<1x8x32xbf16, #tpu.memory_space<vmem>>, vector<1x8x8xbf16>,
    %26 = vector.extract_strided_slice %1 {offsets = [0, 8], sizes = [8, 8], strides = [1, 1]} : vector<8x32xbf16> to vector<8x8xbf16>
    %27 = vector.extract_strided_slice %3 {offsets = [0, 8], sizes = [8, 8], strides = [1, 1]} : vector<8x64xbf16> to vector<8x8xbf16>
    %28 = vector.extract_strided_slice %3 {offsets = [0, 40], sizes = [8, 8], strides = [1, 1]} : vector<8x64xbf16> to vector<8x8xbf16>
    %cst_12 = arith.constant dense<0.000000e+00> : vector<8x8xf32>
    %29 = tpu.matmul %26, %27, %cst_12 {dimension_numbers = #tpu.dot_dimension_numbers<[1], [1], [0], [0], [0, 0, 1, 0], [], []>} : vector<8x8xbf16>, vector<8x8xbf16>, vector<8x8xf32> -> vector<8x8xf32>
    %cst_13 = arith.constant 0.353553385 : f32
    %30 = vector.broadcast %cst_13 : f32 to vector<8x8xf32>
    %31 = arith.mulf %29, %30 : vector<8x8xf32>
    %cst_14 = arith.constant dense<0xFF800000> : vector<8xf32>
    %32 = vector.multi_reduction <maximumf>, %31, %cst_14 [1] : vector<8x8xf32> to vector<8xf32>
    %33 = vector.shape_cast %32 : vector<8xf32> to vector<8x1xf32>
    %34 = vector.broadcast %33 : vector<8x1xf32> to vector<8x8xf32>
    %35 = arith.subf %31, %34 : vector<8x8xf32>
    %36 = math.exp %35 : vector<8x8xf32>
    %cst_15 = arith.constant dense<0.000000e+00> : vector<8xf32>
    %37 = vector.multi_reduction <add>, %36, %cst_15 [1] : vector<8x8xf32> to vector<8xf32>
    %38 = vector.shape_cast %37 : vector<8xf32> to vector<8x1xf32>
    %39 = tpu.reciprocal %38 {approx = true} : vector<8x1xf32> -> vector<8x1xf32>
    %40 = vector.broadcast %39 : vector<8x1xf32> to vector<8x8xf32>
    %41 = arith.mulf %36, %40 : vector<8x8xf32>
    %42 = arith.truncf %41 : vector<8x8xf32> to vector<8x8xbf16>
    %cst_16 = arith.constant dense<0.000000e+00> : vector<8x8xf32>
    %43 = tpu.matmul %42, %28, %cst_16 {dimension_numbers = #tpu.dot_dimension_numbers<[1], [0], [0], [1], [0, 0, 1, 1], [], []>} : vector<8x8xbf16>, vector<8x8xbf16>, vector<8x8xf32> -> vector<8x8xf32>
    %44 = arith.truncf %43 : vector<8x8xf32> to vector<8x8xbf16>
    %c0_17 = arith.constant 0 : index
    %c0_18 = arith.constant 0 : index
    %c8 = arith.constant 8 : index
    %45 = vector.load %arg4[%c0_17, %c0_18, %c8] : memref<1x8x32xbf16, #tpu.memory_space<vmem>>, vector<1x8x8xbf16>
    %46 = vector.shape_cast %45 : vector<1x8x8xbf16> to vector<8x8xbf16>
    %47 = vector.shape_cast %44 : vector<8x8xbf16> to vector<1x8x8xbf16>
    tpu.vector_store %arg4[%c0_17, %c0_18, %c8], %47 {strides = array<i32>} : memref<1x8x32xbf16, #tpu.memory_space<vmem>>, vector<1x8x8xbf16>,
    %48 = vector.extract_strided_slice %1 {offsets = [0, 16], sizes = [8, 8], strides = [1, 1]} : vector<8x32xbf16> to vector<8x8xbf16>
    %49 = vector.extract_strided_slice %3 {offsets = [0, 16], sizes = [8, 8], strides = [1, 1]} : vector<8x64xbf16> to vector<8x8xbf16>
    %50 = vector.extract_strided_slice %3 {offsets = [0, 48], sizes = [8, 8], strides = [1, 1]} : vector<8x64xbf16> to vector<8x8xbf16>
    %cst_19 = arith.constant dense<0.000000e+00> : vector<8x8xf32>
    %51 = tpu.matmul %48, %49, %cst_19 {dimension_numbers = #tpu.dot_dimension_numbers<[1], [1], [0], [0], [0, 0, 1, 0], [], []>} : vector<8x8xbf16>, vector<8x8xbf16>, vector<8x8xf32> -> vector<8x8xf32>
    %cst_20 = arith.constant 0.353553385 : f32
    %52 = vector.broadcast %cst_20 : f32 to vector<8x8xf32>
    %53 = arith.mulf %51, %52 : vector<8x8xf32>
    %cst_21 = arith.constant dense<0xFF800000> : vector<8xf32>
    %54 = vector.multi_reduction <maximumf>, %53, %cst_21 [1] : vector<8x8xf32> to vector<8xf32>
    %55 = vector.shape_cast %54 : vector<8xf32> to vector<8x1xf32>
    %56 = vector.broadcast %55 : vector<8x1xf32> to vector<8x8xf32>
    %57 = arith.subf %53, %56 : vector<8x8xf32>
    %58 = math.exp %57 : vector<8x8xf32>
    %cst_22 = arith.constant dense<0.000000e+00> : vector<8xf32>
    %59 = vector.multi_reduction <add>, %58, %cst_22 [1] : vector<8x8xf32> to vector<8xf32>
    %60 = vector.shape_cast %59 : vector<8xf32> to vector<8x1xf32>
    %61 = tpu.reciprocal %60 {approx = true} : vector<8x1xf32> -> vector<8x1xf32>
    %62 = vector.broadcast %61 : vector<8x1xf32> to vector<8x8xf32>
    %63 = arith.mulf %58, %62 : vector<8x8xf32>
    %64 = arith.truncf %63 : vector<8x8xf32> to vector<8x8xbf16>
    %cst_23 = arith.constant dense<0.000000e+00> : vector<8x8xf32>
    %65 = tpu.matmul %64, %50, %cst_23 {dimension_numbers = #tpu.dot_dimension_numbers<[1], [0], [0], [1], [0, 0, 1, 1], [], []>} : vector<8x8xbf16>, vector<8x8xbf16>, vector<8x8xf32> -> vector<8x8xf32>
    %66 = arith.truncf %65 : vector<8x8xf32> to vector<8x8xbf16>
    %c0_24 = arith.constant 0 : index
    %c0_25 = arith.constant 0 : index
    %c16 = arith.constant 16 : index
    %67 = vector.load %arg4[%c0_24, %c0_25, %c16] : memref<1x8x32xbf16, #tpu.memory_space<vmem>>, vector<1x8x8xbf16>
    %68 = vector.shape_cast %67 : vector<1x8x8xbf16> to vector<8x8xbf16>
    %69 = vector.shape_cast %66 : vector<8x8xbf16> to vector<1x8x8xbf16>
    tpu.vector_store %arg4[%c0_24, %c0_25, %c16], %69 {strides = array<i32>} : memref<1x8x32xbf16, #tpu.memory_space<vmem>>, vector<1x8x8xbf16>,
    %70 = vector.extract_strided_slice %1 {offsets = [0, 24], sizes = [8, 8], strides = [1, 1]} : vector<8x32xbf16> to vector<8x8xbf16>
    %71 = vector.extract_strided_slice %3 {offsets = [0, 24], sizes = [8, 8], strides = [1, 1]} : vector<8x64xbf16> to vector<8x8xbf16>
    %72 = vector.extract_strided_slice %3 {offsets = [0, 56], sizes = [8, 8], strides = [1, 1]} : vector<8x64xbf16> to vector<8x8xbf16>
    %cst_26 = arith.constant dense<0.000000e+00> : vector<8x8xf32>
    %73 = tpu.matmul %70, %71, %cst_26 {dimension_numbers = #tpu.dot_dimension_numbers<[1], [1], [0], [0], [0, 0, 1, 0], [], []>} : vector<8x8xbf16>, vector<8x8xbf16>, vector<8x8xf32> -> vector<8x8xf32>
    %cst_27 = arith.constant 0.353553385 : f32
    %74 = vector.broadcast %cst_27 : f32 to vector<8x8xf32>
    %75 = arith.mulf %73, %74 : vector<8x8xf32>
    %cst_28 = arith.constant dense<0xFF800000> : vector<8xf32>
    %76 = vector.multi_reduction <maximumf>, %75, %cst_28 [1] : vector<8x8xf32> to vector<8xf32>
    %77 = vector.shape_cast %76 : vector<8xf32> to vector<8x1xf32>
    %78 = vector.broadcast %77 : vector<8x1xf32> to vector<8x8xf32>
    %79 = arith.subf %75, %78 : vector<8x8xf32>
    %80 = math.exp %79 : vector<8x8xf32>
    %cst_29 = arith.constant dense<0.000000e+00> : vector<8xf32>
    %81 = vector.multi_reduction <add>, %80, %cst_29 [1] : vector<8x8xf32> to vector<8xf32>
    %82 = vector.shape_cast %81 : vector<8xf32> to vector<8x1xf32>
    %83 = tpu.reciprocal %82 {approx = true} : vector<8x1xf32> -> vector<8x1xf32>
    %84 = vector.broadcast %83 : vector<8x1xf32> to vector<8x8xf32>
    %85 = arith.mulf %80, %84 : vector<8x8xf32>
    %86 = arith.truncf %85 : vector<8x8xf32> to vector<8x8xbf16>
    %cst_30 = arith.constant dense<0.000000e+00> : vector<8x8xf32>
    %87 = tpu.matmul %86, %72, %cst_30 {dimension_numbers = #tpu.dot_dimension_numbers<[1], [0], [0], [1], [0, 0, 1, 1], [], []>} : vector<8x8xbf16>, vector<8x8xbf16>, vector<8x8xf32> -> vector<8x8xf32>
    %88 = arith.truncf %87 : vector<8x8xf32> to vector<8x8xbf16>
    %c0_31 = arith.constant 0 : index
    %c0_32 = arith.constant 0 : index
    %c24 = arith.constant 24 : index
    %89 = vector.load %arg4[%c0_31, %c0_32, %c24] : memref<1x8x32xbf16, #tpu.memory_space<vmem>>, vector<1x8x8xbf16>
    %90 = vector.shape_cast %89 : vector<1x8x8xbf16> to vector<8x8xbf16>
    %91 = vector.shape_cast %88 : vector<8x8xbf16> to vector<1x8x8xbf16>
    tpu.vector_store %arg4[%c0_31, %c0_32, %c24], %91 {strides = array<i32>} : memref<1x8x32xbf16, #tpu.memory_space<vmem>>, vector<1x8x8xbf16>,
    return
  }
  func.func @transform_0(%arg0: i32, %arg1: i32) -> (i32, i32, i32) {
    %c0_i32 = arith.constant 0 : i32
    %c0_i32_0 = arith.constant 0 : i32
    return %arg0, %arg1, %c0_i32 : i32, i32, i32
  }
  func.func @transform_1(%arg0: i32, %arg1: i32) -> (i32, i32, i32) {
    %c0_i32 = arith.constant 0 : i32
    %c0_i32_0 = arith.constant 0 : i32
    %c0_i32_1 = arith.constant 0 : i32
    return %arg0, %c0_i32, %c0_i32_0 : i32, i32, i32
  }
  func.func @transform_2(%arg0: i32, %arg1: i32) -> (i32, i32, i32) {
    %c0_i32 = arith.constant 0 : i32
    %c0_i32_0 = arith.constant 0 : i32
    return %arg0, %arg1, %c0_i32 : i32, i32, i32
  }
}

module attributes {stable_mosaic.version = 11 : i64} {
  func.func @_ffn_add_ln_kernel(%arg0: i32, %arg1: i32, %arg2: memref<16x32xf32, #tpu.memory_space<vmem>>, %arg3: memref<32x64xbf16, #tpu.memory_space<vmem>>, %arg4: memref<1x64xf32, #tpu.memory_space<vmem>>, %arg5: memref<64x32xbf16, #tpu.memory_space<vmem>>, %arg6: memref<1x32xf32, #tpu.memory_space<vmem>>, %arg7: memref<1x32xf32, #tpu.memory_space<vmem>>, %arg8: memref<1x32xf32, #tpu.memory_space<vmem>>, %arg9: memref<16x32xf32, #tpu.memory_space<vmem>>, %arg10: memref<16x32xf32, #tpu.memory_space<vmem>>) attributes {dimension_semantics = [#tpu.dimension_semantics<parallel>, #tpu.dimension_semantics<arbitrary>], iteration_bounds = array<i64: 1, 1>, scalar_prefetch = 0 : i64, scratch_operands = 1 : i64, tpu.core_type = #tpu.core_type<tc>, window_params = [{transform_indices = @transform_0, window_bounds = array<i64: 16, 32>}, {transform_indices = @transform_1, window_bounds = array<i64: 32, 64>}, {transform_indices = @transform_2, window_bounds = array<i64: 1, 64>}, {transform_indices = @transform_3, window_bounds = array<i64: 64, 32>}, {pipeline_mode = #tpu.pipeline_mode<synchronous>, transform_indices = @transform_4, window_bounds = array<i64: 1, 32>}, {pipeline_mode = #tpu.pipeline_mode<synchronous>, transform_indices = @transform_5, window_bounds = array<i64: 1, 32>}, {pipeline_mode = #tpu.pipeline_mode<synchronous>, transform_indices = @transform_6, window_bounds = array<i64: 1, 32>}, {transform_indices = @transform_7, window_bounds = array<i64: 16, 32>}]} {
    %c0_i32 = arith.constant 0 : i32
    %0 = arith.cmpi eq, %arg1, %c0_i32 : i32
    %1 = arith.extui %0 : i1 to i32
    %c0_i32_0 = arith.constant 0 : i32
    %2 = arith.cmpi ne, %1, %c0_i32_0 : i32
    scf.if %2 {
      %cst_16 = arith.constant 0.000000e+00 : f32
      %21 = vector.broadcast %cst_16 : f32 to vector<16x32xf32>
      %c0_17 = arith.constant 0 : index
      %c0_18 = arith.constant 0 : index
      %22 = vector.load %arg10[%c0_17, %c0_18] : memref<16x32xf32, #tpu.memory_space<vmem>>, vector<16x32xf32>
      tpu.vector_store %arg10[%c0_17, %c0_18], %21 {strides = array<i32>} : memref<16x32xf32, #tpu.memory_space<vmem>>, vector<16x32xf32>,
    } else {
    }
    %c0 = arith.constant 0 : index
    %c0_1 = arith.constant 0 : index
    %3 = vector.load %arg2[%c0, %c0_1] : memref<16x32xf32, #tpu.memory_space<vmem>>, vector<16x32xf32>
    %4 = arith.truncf %3 : vector<16x32xf32> to vector<16x32xbf16>
    %c0_2 = arith.constant 0 : index
    %c0_3 = arith.constant 0 : index
    %5 = vector.load %arg3[%c0_2, %c0_3] : memref<32x64xbf16, #tpu.memory_space<vmem>>, vector<32x64xbf16>
    %cst = arith.constant dense<0.000000e+00> : vector<16x64xf32>
    %6 = tpu.matmul %4, %5, %cst {dimension_numbers = #tpu.dot_dimension_numbers<[1], [0], [0], [1], [0, 0, 1, 1], [], []>} : vector<16x32xbf16>, vector<32x64xbf16>, vector<16x64xf32> -> vector<16x64xf32>
    %c0_4 = arith.constant 0 : index
    %c0_5 = arith.constant 0 : index
    %7 = vector.load %arg4[%c0_4, %c0_5] : memref<1x64xf32, #tpu.memory_space<vmem>>, vector<1x64xf32>
    %8 = vector.broadcast %7 : vector<1x64xf32> to vector<16x64xf32>
    %9 = arith.addf %6, %8 : vector<16x64xf32>
    %cst_6 = arith.constant 0.000000e+00 : f32
    %10 = vector.broadcast %cst_6 : f32 to vector<16x64xf32>
    %11 = arith.maximumf %9, %10 : vector<16x64xf32>
    %c0_7 = arith.constant 0 : index
    %c0_8 = arith.constant 0 : index
    %12 = vector.load %arg10[%c0_7, %c0_8] : memref<16x32xf32, #tpu.memory_space<vmem>>, vector<16x32xf32>
    %13 = arith.truncf %11 : vector<16x64xf32> to vector<16x64xbf16>
    %c0_9 = arith.constant 0 : index
    %c0_10 = arith.constant 0 : index
    %14 = vector.load %arg5[%c0_9, %c0_10] : memref<64x32xbf16, #tpu.memory_space<vmem>>, vector<64x32xbf16>
    %cst_11 = arith.constant dense<0.000000e+00> : vector<16x32xf32>
    %15 = tpu.matmul %13, %14, %cst_11 {dimension_numbers = #tpu.dot_dimension_numbers<[1], [0], [0], [1], [0, 0, 1, 1], [], []>} : vector<16x64xbf16>, vector<64x32xbf16>, vector<16x32xf32> -> vector<16x32xf32>
    %16 = arith.addf %12, %15 : vector<16x32xf32>
    %c0_12 = arith.constant 0 : index
    %c0_13 = arith.constant 0 : index
    %17 = vector.load %arg10[%c0_12, %c0_13] : memref<16x32xf32, #tpu.memory_space<vmem>>, vector<16x32xf32>
    tpu.vector_store %arg10[%c0_12, %c0_13], %16 {strides = array<i32>} : memref<16x32xf32, #tpu.memory_space<vmem>>, vector<16x32xf32>,
    %c0_i32_14 = arith.constant 0 : i32
    %18 = arith.cmpi eq, %arg1, %c0_i32_14 : i32
    %19 = arith.extui %18 : i1 to i32
    %c0_i32_15 = arith.constant 0 : i32
    %20 = arith.cmpi ne, %19, %c0_i32_15 : i32
    scf.if %20 {
      %c0_16 = arith.constant 0 : index
      %c0_17 = arith.constant 0 : index
      %21 = vector.load %arg10[%c0_16, %c0_17] : memref<16x32xf32, #tpu.memory_space<vmem>>, vector<16x32xf32>
      %c0_18 = arith.constant 0 : index
      %c0_19 = arith.constant 0 : index
      %22 = vector.load %arg6[%c0_18, %c0_19] : memref<1x32xf32, #tpu.memory_space<vmem>>, vector<1x32xf32>
      %23 = vector.broadcast %22 : vector<1x32xf32> to vector<16x32xf32>
      %24 = arith.addf %21, %23 : vector<16x32xf32>
      %25 = arith.addf %24, %3 : vector<16x32xf32>
      %c0_20 = arith.constant 0 : index
      %c0_21 = arith.constant 0 : index
      %26 = vector.load %arg7[%c0_20, %c0_21] : memref<1x32xf32, #tpu.memory_space<vmem>>, vector<1x32xf32>
      %c0_22 = arith.constant 0 : index
      %c0_23 = arith.constant 0 : index
      %27 = vector.load %arg8[%c0_22, %c0_23] : memref<1x32xf32, #tpu.memory_space<vmem>>, vector<1x32xf32>
      %cst_24 = arith.constant dense<0.000000e+00> : vector<16xf32>
      %28 = vector.multi_reduction <add>, %25, %cst_24 [1] : vector<16x32xf32> to vector<16xf32>
      %29 = vector.shape_cast %28 : vector<16xf32> to vector<16x1xf32>
      %cst_25 = arith.constant 3.200000e+01 : f32
      %30 = vector.broadcast %cst_25 : f32 to vector<16x1xf32>
      %31 = arith.divf %29, %30 : vector<16x1xf32>
      %32 = vector.broadcast %31 : vector<16x1xf32> to vector<16x32xf32>
      %33 = arith.subf %25, %32 : vector<16x32xf32>
      %34 = arith.mulf %33, %33 : vector<16x32xf32>
      %cst_26 = arith.constant dense<0.000000e+00> : vector<16xf32>
      %35 = vector.multi_reduction <add>, %34, %cst_26 [1] : vector<16x32xf32> to vector<16xf32>
      %36 = vector.shape_cast %35 : vector<16xf32> to vector<16x1xf32>
      %cst_27 = arith.constant 3.200000e+01 : f32
      %37 = vector.broadcast %cst_27 : f32 to vector<16x1xf32>
      %38 = arith.divf %36, %37 : vector<16x1xf32>
      %cst_28 = arith.constant 9.99999974E-6 : f32
      %39 = vector.broadcast %cst_28 : f32 to vector<16x1xf32>
      %40 = arith.addf %38, %39 : vector<16x1xf32>
      %41 = math.rsqrt %40 : vector<16x1xf32>
      %42 = vector.broadcast %41 : vector<16x1xf32> to vector<16x32xf32>
      %43 = arith.mulf %33, %42 : vector<16x32xf32>
      %44 = vector.broadcast %26 : vector<1x32xf32> to vector<16x32xf32>
      %45 = arith.mulf %43, %44 : vector<16x32xf32>
      %46 = vector.broadcast %27 : vector<1x32xf32> to vector<16x32xf32>
      %47 = arith.addf %45, %46 : vector<16x32xf32>
      %c0_29 = arith.constant 0 : index
      %c0_30 = arith.constant 0 : index
      %48 = vector.load %arg9[%c0_29, %c0_30] : memref<16x32xf32, #tpu.memory_space<vmem>>, vector<16x32xf32>
      tpu.vector_store %arg9[%c0_29, %c0_30], %47 {strides = array<i32>} : memref<16x32xf32, #tpu.memory_space<vmem>>, vector<16x32xf32>,
    } else {
    }
    return
  }
  func.func @transform_0(%arg0: i32, %arg1: i32) -> (i32, i32) {
    %c0_i32 = arith.constant 0 : i32
    %c0_i32_0 = arith.constant 0 : i32
    return %arg0, %c0_i32 : i32, i32
  }
  func.func @transform_1(%arg0: i32, %arg1: i32) -> (i32, i32) {
    %c0_i32 = arith.constant 0 : i32
    %c0_i32_0 = arith.constant 0 : i32
    return %c0_i32, %arg1 : i32, i32
  }
  func.func @transform_2(%arg0: i32, %arg1: i32) -> (i32, i32) {
    %c0_i32 = arith.constant 0 : i32
    %c0_i32_0 = arith.constant 0 : i32
    return %c0_i32, %arg1 : i32, i32
  }
  func.func @transform_3(%arg0: i32, %arg1: i32) -> (i32, i32) {
    %c0_i32 = arith.constant 0 : i32
    %c0_i32_0 = arith.constant 0 : i32
    return %arg1, %c0_i32 : i32, i32
  }
  func.func @transform_4(%arg0: i32, %arg1: i32) -> (i32, i32) {
    %c0_i32 = arith.constant 0 : i32
    %c0_i32_0 = arith.constant 0 : i32
    %c0_i32_1 = arith.constant 0 : i32
    return %c0_i32, %c0_i32_0 : i32, i32
  }
  func.func @transform_5(%arg0: i32, %arg1: i32) -> (i32, i32) {
    %c0_i32 = arith.constant 0 : i32
    %c0_i32_0 = arith.constant 0 : i32
    %c0_i32_1 = arith.constant 0 : i32
    return %c0_i32, %c0_i32_0 : i32, i32
  }
  func.func @transform_6(%arg0: i32, %arg1: i32) -> (i32, i32) {
    %c0_i32 = arith.constant 0 : i32
    %c0_i32_0 = arith.constant 0 : i32
    %c0_i32_1 = arith.constant 0 : i32
    return %c0_i32, %c0_i32_0 : i32, i32
  }
  func.func @transform_7(%arg0: i32, %arg1: i32) -> (i32, i32) {
    %c0_i32 = arith.constant 0 : i32
    %c0_i32_0 = arith.constant 0 : i32
    return %arg0, %c0_i32 : i32, i32
  }
}

module attributes {stable_mosaic.version = 11 : i64} {
  func.func @_linear_kernel(%arg0: i32, %arg1: i32, %arg2: memref<16x32xf32, #tpu.memory_space<vmem>>, %arg3: memref<32x64xbf16, #tpu.memory_space<vmem>>, %arg4: memref<1x64xf32, #tpu.memory_space<vmem>>, %arg5: memref<16x64xbf16, #tpu.memory_space<vmem>>) attributes {dimension_semantics = [#tpu.dimension_semantics<parallel>, #tpu.dimension_semantics<parallel>], iteration_bounds = array<i64: 1, 1>, scalar_prefetch = 0 : i64, scratch_operands = 0 : i64, tpu.core_type = #tpu.core_type<tc>, window_params = [{transform_indices = @transform_0, window_bounds = array<i64: 16, 32>}, {transform_indices = @transform_1, window_bounds = array<i64: 32, 64>}, {transform_indices = @transform_2, window_bounds = array<i64: 1, 64>}, {transform_indices = @transform_3, window_bounds = array<i64: 16, 64>}]} {
    %c0 = arith.constant 0 : index
    %c0_0 = arith.constant 0 : index
    %0 = vector.load %arg2[%c0, %c0_0] : memref<16x32xf32, #tpu.memory_space<vmem>>, vector<16x32xf32>
    %1 = arith.truncf %0 : vector<16x32xf32> to vector<16x32xbf16>
    %c0_1 = arith.constant 0 : index
    %c0_2 = arith.constant 0 : index
    %2 = vector.load %arg3[%c0_1, %c0_2] : memref<32x64xbf16, #tpu.memory_space<vmem>>, vector<32x64xbf16>
    %cst = arith.constant dense<0.000000e+00> : vector<16x64xf32>
    %3 = tpu.matmul %1, %2, %cst {dimension_numbers = #tpu.dot_dimension_numbers<[1], [0], [0], [1], [0, 0, 1, 1], [], []>} : vector<16x32xbf16>, vector<32x64xbf16>, vector<16x64xf32> -> vector<16x64xf32>
    %c0_3 = arith.constant 0 : index
    %c0_4 = arith.constant 0 : index
    %4 = vector.load %arg4[%c0_3, %c0_4] : memref<1x64xf32, #tpu.memory_space<vmem>>, vector<1x64xf32>
    %5 = vector.broadcast %4 : vector<1x64xf32> to vector<16x64xf32>
    %6 = arith.addf %3, %5 : vector<16x64xf32>
    %7 = arith.truncf %6 : vector<16x64xf32> to vector<16x64xbf16>
    %c0_5 = arith.constant 0 : index
    %c0_6 = arith.constant 0 : index
    %8 = vector.load %arg5[%c0_5, %c0_6] : memref<16x64xbf16, #tpu.memory_space<vmem>>, vector<16x64xbf16>
    tpu.vector_store %arg5[%c0_5, %c0_6], %7 {strides = array<i32>} : memref<16x64xbf16, #tpu.memory_space<vmem>>, vector<16x64xbf16>,
    return
  }
  func.func @transform_0(%arg0: i32, %arg1: i32) -> (i32, i32) {
    %c0_i32 = arith.constant 0 : i32
    %c0_i32_0 = arith.constant 0 : i32
    return %arg0, %c0_i32 : i32, i32
  }
  func.func @transform_1(%arg0: i32, %arg1: i32) -> (i32, i32) {
    %c0_i32 = arith.constant 0 : i32
    %c0_i32_0 = arith.constant 0 : i32
    return %c0_i32, %arg1 : i32, i32
  }
  func.func @transform_2(%arg0: i32, %arg1: i32) -> (i32, i32) {
    %c0_i32 = arith.constant 0 : i32
    %c0_i32_0 = arith.constant 0 : i32
    return %c0_i32, %arg1 : i32, i32
  }
  func.func @transform_3(%arg0: i32, %arg1: i32) -> (i32, i32) {
    %c0_i32 = arith.constant 0 : i32
    return %arg0, %arg1 : i32, i32
  }
}

module attributes {stable_mosaic.version = 11 : i64} {
  func.func @_linear_kernel(%arg0: i32, %arg1: i32, %arg2: memref<16x32xf32, #tpu.memory_space<vmem>>, %arg3: memref<32x32xbf16, #tpu.memory_space<vmem>>, %arg4: memref<1x32xf32, #tpu.memory_space<vmem>>, %arg5: memref<16x32xbf16, #tpu.memory_space<vmem>>) attributes {dimension_semantics = [#tpu.dimension_semantics<parallel>, #tpu.dimension_semantics<parallel>], iteration_bounds = array<i64: 1, 1>, scalar_prefetch = 0 : i64, scratch_operands = 0 : i64, tpu.core_type = #tpu.core_type<tc>, window_params = [{transform_indices = @transform_0, window_bounds = array<i64: 16, 32>}, {transform_indices = @transform_1, window_bounds = array<i64: 32, 32>}, {transform_indices = @transform_2, window_bounds = array<i64: 1, 32>}, {transform_indices = @transform_3, window_bounds = array<i64: 16, 32>}]} {
    %c0 = arith.constant 0 : index
    %c0_0 = arith.constant 0 : index
    %0 = vector.load %arg2[%c0, %c0_0] : memref<16x32xf32, #tpu.memory_space<vmem>>, vector<16x32xf32>
    %1 = arith.truncf %0 : vector<16x32xf32> to vector<16x32xbf16>
    %c0_1 = arith.constant 0 : index
    %c0_2 = arith.constant 0 : index
    %2 = vector.load %arg3[%c0_1, %c0_2] : memref<32x32xbf16, #tpu.memory_space<vmem>>, vector<32x32xbf16>
    %cst = arith.constant dense<0.000000e+00> : vector<16x32xf32>
    %3 = tpu.matmul %1, %2, %cst {dimension_numbers = #tpu.dot_dimension_numbers<[1], [0], [0], [1], [0, 0, 1, 1], [], []>} : vector<16x32xbf16>, vector<32x32xbf16>, vector<16x32xf32> -> vector<16x32xf32>
    %c0_3 = arith.constant 0 : index
    %c0_4 = arith.constant 0 : index
    %4 = vector.load %arg4[%c0_3, %c0_4] : memref<1x32xf32, #tpu.memory_space<vmem>>, vector<1x32xf32>
    %5 = vector.broadcast %4 : vector<1x32xf32> to vector<16x32xf32>
    %6 = arith.addf %3, %5 : vector<16x32xf32>
    %7 = arith.truncf %6 : vector<16x32xf32> to vector<16x32xbf16>
    %c0_5 = arith.constant 0 : index
    %c0_6 = arith.constant 0 : index
    %8 = vector.load %arg5[%c0_5, %c0_6] : memref<16x32xbf16, #tpu.memory_space<vmem>>, vector<16x32xbf16>
    tpu.vector_store %arg5[%c0_5, %c0_6], %7 {strides = array<i32>} : memref<16x32xbf16, #tpu.memory_space<vmem>>, vector<16x32xbf16>,
    return
  }
  func.func @transform_0(%arg0: i32, %arg1: i32) -> (i32, i32) {
    %c0_i32 = arith.constant 0 : i32
    %c0_i32_0 = arith.constant 0 : i32
    return %arg0, %c0_i32 : i32, i32
  }
  func.func @transform_1(%arg0: i32, %arg1: i32) -> (i32, i32) {
    %c0_i32 = arith.constant 0 : i32
    %c0_i32_0 = arith.constant 0 : i32
    return %c0_i32, %arg1 : i32, i32
  }
  func.func @transform_2(%arg0: i32, %arg1: i32) -> (i32, i32) {
    %c0_i32 = arith.constant 0 : i32
    %c0_i32_0 = arith.constant 0 : i32
    return %c0_i32, %arg1 : i32, i32
  }
  func.func @transform_3(%arg0: i32, %arg1: i32) -> (i32, i32) {
    %c0_i32 = arith.constant 0 : i32
    return %arg0, %arg1 : i32, i32
  }
}

module attributes {stable_mosaic.version = 11 : i64} {
  func.func @_attention_kernel(%arg0: i32, %arg1: i32, %arg2: memref<1x8x32xbf16, #tpu.memory_space<vmem>>, %arg3: memref<1x8x64xbf16, #tpu.memory_space<vmem>>, %arg4: memref<1x8x32xbf16, #tpu.memory_space<vmem>>) attributes {dimension_semantics = [#tpu.dimension_semantics<parallel>, #tpu.dimension_semantics<parallel>], iteration_bounds = array<i64: 2, 1>, scalar_prefetch = 0 : i64, scratch_operands = 0 : i64, tpu.core_type = #tpu.core_type<tc>, window_params = [{transform_indices = @transform_0, window_bounds = array<i64: 1, 8, 32>}, {transform_indices = @transform_1, window_bounds = array<i64: 1, 8, 64>}, {transform_indices = @transform_2, window_bounds = array<i64: 1, 8, 32>}]} {
    %c0 = arith.constant 0 : index
    %c0_0 = arith.constant 0 : index
    %c0_1 = arith.constant 0 : index
    %0 = vector.load %arg2[%c0, %c0_0, %c0_1] : memref<1x8x32xbf16, #tpu.memory_space<vmem>>, vector<1x8x32xbf16>
    %1 = vector.shape_cast %0 : vector<1x8x32xbf16> to vector<8x32xbf16>
    %c0_2 = arith.constant 0 : index
    %c0_3 = arith.constant 0 : index
    %c0_4 = arith.constant 0 : index
    %2 = vector.load %arg3[%c0_2, %c0_3, %c0_4] : memref<1x8x64xbf16, #tpu.memory_space<vmem>>, vector<1x8x64xbf16>
    %3 = vector.shape_cast %2 : vector<1x8x64xbf16> to vector<8x64xbf16>
    %c8_i32 = arith.constant 8 : i32
    %4 = arith.muli %arg1, %c8_i32 : i32
    %5 = tpu.iota {dimensions = array<i32: 0>} : vector<8x8xi32>
    %6 = vector.broadcast %4 : i32 to vector<8x8xi32>
    %7 = arith.addi %5, %6 : vector<8x8xi32>
    %8 = tpu.iota {dimensions = array<i32: 1>} : vector<8x8xi32>
    %9 = arith.cmpi sgt, %8, %7 : vector<8x8xi32>
    %cst = arith.constant -1.000000e+09 : f32
    %cst_5 = arith.constant 0.000000e+00 : f32
    %10 = vector.broadcast %cst : f32 to vector<8x8xf32>
    %11 = vector.broadcast %cst_5 : f32 to vector<8x8xf32>
    %12 = arith.select %9, %10, %11 : vector<8x8xi1>, vector<8x8xf32>
    %13 = vector.extract_strided_slice %1 {offsets = [0, 0], sizes = [8, 8], strides = [1, 1]} : vector<8x32xbf16> to vector<8x8xbf16>
    %14 = vector.extract_strided_slice %3 {offsets = [0, 0], sizes = [8, 8], strides = [1, 1]} : vector<8x64xbf16> to vector<8x8xbf16>
    %15 = vector.extract_strided_slice %3 {offsets = [0, 32], sizes = [8, 8], strides = [1, 1]} : vector<8x64xbf16> to vector<8x8xbf16>
    %cst_6 = arith.constant dense<0.000000e+00> : vector<8x8xf32>
    %16 = tpu.matmul %13, %14, %cst_6 {dimension_numbers = #tpu.dot_dimension_numbers<[1], [1], [0], [0], [0, 0, 1, 0], [], []>} : vector<8x8xbf16>, vector<8x8xbf16>, vector<8x8xf32> -> vector<8x8xf32>
    %cst_7 = arith.constant 0.353553385 : f32
    %17 = vector.broadcast %cst_7 : f32 to vector<8x8xf32>
    %18 = arith.mulf %16, %17 : vector<8x8xf32>
    %19 = arith.addf %18, %12 : vector<8x8xf32>
    %cst_8 = arith.constant dense<0xFF800000> : vector<8xf32>
    %20 = vector.multi_reduction <maximumf>, %19, %cst_8 [1] : vector<8x8xf32> to vector<8xf32>
    %21 = vector.shape_cast %20 : vector<8xf32> to vector<8x1xf32>
    %22 = vector.broadcast %21 : vector<8x1xf32> to vector<8x8xf32>
    %23 = arith.subf %19, %22 : vector<8x8xf32>
    %24 = math.exp %23 : vector<8x8xf32>
    %cst_9 = arith.constant dense<0.000000e+00> : vector<8xf32>
    %25 = vector.multi_reduction <add>, %24, %cst_9 [1] : vector<8x8xf32> to vector<8xf32>
    %26 = vector.shape_cast %25 : vector<8xf32> to vector<8x1xf32>
    %27 = tpu.reciprocal %26 {approx = true} : vector<8x1xf32> -> vector<8x1xf32>
    %28 = vector.broadcast %27 : vector<8x1xf32> to vector<8x8xf32>
    %29 = arith.mulf %24, %28 : vector<8x8xf32>
    %30 = arith.truncf %29 : vector<8x8xf32> to vector<8x8xbf16>
    %cst_10 = arith.constant dense<0.000000e+00> : vector<8x8xf32>
    %31 = tpu.matmul %30, %15, %cst_10 {dimension_numbers = #tpu.dot_dimension_numbers<[1], [0], [0], [1], [0, 0, 1, 1], [], []>} : vector<8x8xbf16>, vector<8x8xbf16>, vector<8x8xf32> -> vector<8x8xf32>
    %32 = arith.truncf %31 : vector<8x8xf32> to vector<8x8xbf16>
    %c0_11 = arith.constant 0 : index
    %c0_12 = arith.constant 0 : index
    %c0_13 = arith.constant 0 : index
    %33 = vector.load %arg4[%c0_11, %c0_12, %c0_13] : memref<1x8x32xbf16, #tpu.memory_space<vmem>>, vector<1x8x8xbf16>
    %34 = vector.shape_cast %33 : vector<1x8x8xbf16> to vector<8x8xbf16>
    %35 = vector.shape_cast %32 : vector<8x8xbf16> to vector<1x8x8xbf16>
    tpu.vector_store %arg4[%c0_11, %c0_12, %c0_13], %35 {strides = array<i32>} : memref<1x8x32xbf16, #tpu.memory_space<vmem>>, vector<1x8x8xbf16>,
    %36 = vector.extract_strided_slice %1 {offsets = [0, 8], sizes = [8, 8], strides = [1, 1]} : vector<8x32xbf16> to vector<8x8xbf16>
    %37 = vector.extract_strided_slice %3 {offsets = [0, 8], sizes = [8, 8], strides = [1, 1]} : vector<8x64xbf16> to vector<8x8xbf16>
    %38 = vector.extract_strided_slice %3 {offsets = [0, 40], sizes = [8, 8], strides = [1, 1]} : vector<8x64xbf16> to vector<8x8xbf16>
    %cst_14 = arith.constant dense<0.000000e+00> : vector<8x8xf32>
    %39 = tpu.matmul %36, %37, %cst_14 {dimension_numbers = #tpu.dot_dimension_numbers<[1], [1], [0], [0], [0, 0, 1, 0], [], []>} : vector<8x8xbf16>, vector<8x8xbf16>, vector<8x8xf32> -> vector<8x8xf32>
    %cst_15 = arith.constant 0.353553385 : f32
    %40 = vector.broadcast %cst_15 : f32 to vector<8x8xf32>
    %41 = arith.mulf %39, %40 : vector<8x8xf32>
    %42 = arith.addf %41, %12 : vector<8x8xf32>
    %cst_16 = arith.constant dense<0xFF800000> : vector<8xf32>
    %43 = vector.multi_reduction <maximumf>, %42, %cst_16 [1] : vector<8x8xf32> to vector<8xf32>
    %44 = vector.shape_cast %43 : vector<8xf32> to vector<8x1xf32>
    %45 = vector.broadcast %44 : vector<8x1xf32> to vector<8x8xf32>
    %46 = arith.subf %42, %45 : vector<8x8xf32>
    %47 = math.exp %46 : vector<8x8xf32>
    %cst_17 = arith.constant dense<0.000000e+00> : vector<8xf32>
    %48 = vector.multi_reduction <add>, %47, %cst_17 [1] : vector<8x8xf32> to vector<8xf32>
    %49 = vector.shape_cast %48 : vector<8xf32> to vector<8x1xf32>
    %50 = tpu.reciprocal %49 {approx = true} : vector<8x1xf32> -> vector<8x1xf32>
    %51 = vector.broadcast %50 : vector<8x1xf32> to vector<8x8xf32>
    %52 = arith.mulf %47, %51 : vector<8x8xf32>
    %53 = arith.truncf %52 : vector<8x8xf32> to vector<8x8xbf16>
    %cst_18 = arith.constant dense<0.000000e+00> : vector<8x8xf32>
    %54 = tpu.matmul %53, %38, %cst_18 {dimension_numbers = #tpu.dot_dimension_numbers<[1], [0], [0], [1], [0, 0, 1, 1], [], []>} : vector<8x8xbf16>, vector<8x8xbf16>, vector<8x8xf32> -> vector<8x8xf32>
    %55 = arith.truncf %54 : vector<8x8xf32> to vector<8x8xbf16>
    %c0_19 = arith.constant 0 : index
    %c0_20 = arith.constant 0 : index
    %c8 = arith.constant 8 : index
    %56 = vector.load %arg4[%c0_19, %c0_20, %c8] : memref<1x8x32xbf16, #tpu.memory_space<vmem>>, vector<1x8x8xbf16>
    %57 = vector.shape_cast %56 : vector<1x8x8xbf16> to vector<8x8xbf16>
    %58 = vector.shape_cast %55 : vector<8x8xbf16> to vector<1x8x8xbf16>
    tpu.vector_store %arg4[%c0_19, %c0_20, %c8], %58 {strides = array<i32>} : memref<1x8x32xbf16, #tpu.memory_space<vmem>>, vector<1x8x8xbf16>,
    %59 = vector.extract_strided_slice %1 {offsets = [0, 16], sizes = [8, 8], strides = [1, 1]} : vector<8x32xbf16> to vector<8x8xbf16>
    %60 = vector.extract_strided_slice %3 {offsets = [0, 16], sizes = [8, 8], strides = [1, 1]} : vector<8x64xbf16> to vector<8x8xbf16>
    %61 = vector.extract_strided_slice %3 {offsets = [0, 48], sizes = [8, 8], strides = [1, 1]} : vector<8x64xbf16> to vector<8x8xbf16>
    %cst_21 = arith.constant dense<0.000000e+00> : vector<8x8xf32>
    %62 = tpu.matmul %59, %60, %cst_21 {dimension_numbers = #tpu.dot_dimension_numbers<[1], [1], [0], [0], [0, 0, 1, 0], [], []>} : vector<8x8xbf16>, vector<8x8xbf16>, vector<8x8xf32> -> vector<8x8xf32>
    %cst_22 = arith.constant 0.353553385 : f32
    %63 = vector.broadcast %cst_22 : f32 to vector<8x8xf32>
    %64 = arith.mulf %62, %63 : vector<8x8xf32>
    %65 = arith.addf %64, %12 : vector<8x8xf32>
    %cst_23 = arith.constant dense<0xFF800000> : vector<8xf32>
    %66 = vector.multi_reduction <maximumf>, %65, %cst_23 [1] : vector<8x8xf32> to vector<8xf32>
    %67 = vector.shape_cast %66 : vector<8xf32> to vector<8x1xf32>
    %68 = vector.broadcast %67 : vector<8x1xf32> to vector<8x8xf32>
    %69 = arith.subf %65, %68 : vector<8x8xf32>
    %70 = math.exp %69 : vector<8x8xf32>
    %cst_24 = arith.constant dense<0.000000e+00> : vector<8xf32>
    %71 = vector.multi_reduction <add>, %70, %cst_24 [1] : vector<8x8xf32> to vector<8xf32>
    %72 = vector.shape_cast %71 : vector<8xf32> to vector<8x1xf32>
    %73 = tpu.reciprocal %72 {approx = true} : vector<8x1xf32> -> vector<8x1xf32>
    %74 = vector.broadcast %73 : vector<8x1xf32> to vector<8x8xf32>
    %75 = arith.mulf %70, %74 : vector<8x8xf32>
    %76 = arith.truncf %75 : vector<8x8xf32> to vector<8x8xbf16>
    %cst_25 = arith.constant dense<0.000000e+00> : vector<8x8xf32>
    %77 = tpu.matmul %76, %61, %cst_25 {dimension_numbers = #tpu.dot_dimension_numbers<[1], [0], [0], [1], [0, 0, 1, 1], [], []>} : vector<8x8xbf16>, vector<8x8xbf16>, vector<8x8xf32> -> vector<8x8xf32>
    %78 = arith.truncf %77 : vector<8x8xf32> to vector<8x8xbf16>
    %c0_26 = arith.constant 0 : index
    %c0_27 = arith.constant 0 : index
    %c16 = arith.constant 16 : index
    %79 = vector.load %arg4[%c0_26, %c0_27, %c16] : memref<1x8x32xbf16, #tpu.memory_space<vmem>>, vector<1x8x8xbf16>
    %80 = vector.shape_cast %79 : vector<1x8x8xbf16> to vector<8x8xbf16>
    %81 = vector.shape_cast %78 : vector<8x8xbf16> to vector<1x8x8xbf16>
    tpu.vector_store %arg4[%c0_26, %c0_27, %c16], %81 {strides = array<i32>} : memref<1x8x32xbf16, #tpu.memory_space<vmem>>, vector<1x8x8xbf16>,
    %82 = vector.extract_strided_slice %1 {offsets = [0, 24], sizes = [8, 8], strides = [1, 1]} : vector<8x32xbf16> to vector<8x8xbf16>
    %83 = vector.extract_strided_slice %3 {offsets = [0, 24], sizes = [8, 8], strides = [1, 1]} : vector<8x64xbf16> to vector<8x8xbf16>
    %84 = vector.extract_strided_slice %3 {offsets = [0, 56], sizes = [8, 8], strides = [1, 1]} : vector<8x64xbf16> to vector<8x8xbf16>
    %cst_28 = arith.constant dense<0.000000e+00> : vector<8x8xf32>
    %85 = tpu.matmul %82, %83, %cst_28 {dimension_numbers = #tpu.dot_dimension_numbers<[1], [1], [0], [0], [0, 0, 1, 0], [], []>} : vector<8x8xbf16>, vector<8x8xbf16>, vector<8x8xf32> -> vector<8x8xf32>
    %cst_29 = arith.constant 0.353553385 : f32
    %86 = vector.broadcast %cst_29 : f32 to vector<8x8xf32>
    %87 = arith.mulf %85, %86 : vector<8x8xf32>
    %88 = arith.addf %87, %12 : vector<8x8xf32>
    %cst_30 = arith.constant dense<0xFF800000> : vector<8xf32>
    %89 = vector.multi_reduction <maximumf>, %88, %cst_30 [1] : vector<8x8xf32> to vector<8xf32>
    %90 = vector.shape_cast %89 : vector<8xf32> to vector<8x1xf32>
    %91 = vector.broadcast %90 : vector<8x1xf32> to vector<8x8xf32>
    %92 = arith.subf %88, %91 : vector<8x8xf32>
    %93 = math.exp %92 : vector<8x8xf32>
    %cst_31 = arith.constant dense<0.000000e+00> : vector<8xf32>
    %94 = vector.multi_reduction <add>, %93, %cst_31 [1] : vector<8x8xf32> to vector<8xf32>
    %95 = vector.shape_cast %94 : vector<8xf32> to vector<8x1xf32>
    %96 = tpu.reciprocal %95 {approx = true} : vector<8x1xf32> -> vector<8x1xf32>
    %97 = vector.broadcast %96 : vector<8x1xf32> to vector<8x8xf32>
    %98 = arith.mulf %93, %97 : vector<8x8xf32>
    %99 = arith.truncf %98 : vector<8x8xf32> to vector<8x8xbf16>
    %cst_32 = arith.constant dense<0.000000e+00> : vector<8x8xf32>
    %100 = tpu.matmul %99, %84, %cst_32 {dimension_numbers = #tpu.dot_dimension_numbers<[1], [0], [0], [1], [0, 0, 1, 1], [], []>} : vector<8x8xbf16>, vector<8x8xbf16>, vector<8x8xf32> -> vector<8x8xf32>
    %101 = arith.truncf %100 : vector<8x8xf32> to vector<8x8xbf16>
    %c0_33 = arith.constant 0 : index
    %c0_34 = arith.constant 0 : index
    %c24 = arith.constant 24 : index
    %102 = vector.load %arg4[%c0_33, %c0_34, %c24] : memref<1x8x32xbf16, #tpu.memory_space<vmem>>, vector<1x8x8xbf16>
    %103 = vector.shape_cast %102 : vector<1x8x8xbf16> to vector<8x8xbf16>
    %104 = vector.shape_cast %101 : vector<8x8xbf16> to vector<1x8x8xbf16>
    tpu.vector_store %arg4[%c0_33, %c0_34, %c24], %104 {strides = array<i32>} : memref<1x8x32xbf16, #tpu.memory_space<vmem>>, vector<1x8x8xbf16>,
    return
  }
  func.func @transform_0(%arg0: i32, %arg1: i32) -> (i32, i32, i32) {
    %c0_i32 = arith.constant 0 : i32
    %c0_i32_0 = arith.constant 0 : i32
    return %arg0, %arg1, %c0_i32 : i32, i32, i32
  }
  func.func @transform_1(%arg0: i32, %arg1: i32) -> (i32, i32, i32) {
    %c0_i32 = arith.constant 0 : i32
    %c0_i32_0 = arith.constant 0 : i32
    %c0_i32_1 = arith.constant 0 : i32
    return %arg0, %c0_i32, %c0_i32_0 : i32, i32, i32
  }
  func.func @transform_2(%arg0: i32, %arg1: i32) -> (i32, i32, i32) {
    %c0_i32 = arith.constant 0 : i32
    %c0_i32_0 = arith.constant 0 : i32
    return %arg0, %arg1, %c0_i32 : i32, i32, i32
  }
}

module attributes {stable_mosaic.version = 11 : i64} {
  func.func @_linear_kernel(%arg0: i32, %arg1: i32, %arg2: memref<16x32xf32, #tpu.memory_space<vmem>>, %arg3: memref<32x128xbf16, #tpu.memory_space<vmem>>, %arg4: memref<1x128xf32, #tpu.memory_space<vmem>>, %arg5: memref<16x128xf32, #tpu.memory_space<vmem>>) attributes {dimension_semantics = [#tpu.dimension_semantics<parallel>, #tpu.dimension_semantics<parallel>], iteration_bounds = array<i64: 1, 1>, scalar_prefetch = 0 : i64, scratch_operands = 0 : i64, tpu.core_type = #tpu.core_type<tc>, window_params = [{transform_indices = @transform_0, window_bounds = array<i64: 16, 32>}, {transform_indices = @transform_1, window_bounds = array<i64: 32, 128>}, {transform_indices = @transform_2, window_bounds = array<i64: 1, 128>}, {transform_indices = @transform_3, window_bounds = array<i64: 16, 128>}]} {
    %c0 = arith.constant 0 : index
    %c0_0 = arith.constant 0 : index
    %0 = vector.load %arg2[%c0, %c0_0] : memref<16x32xf32, #tpu.memory_space<vmem>>, vector<16x32xf32>
    %1 = arith.truncf %0 : vector<16x32xf32> to vector<16x32xbf16>
    %c0_1 = arith.constant 0 : index
    %c0_2 = arith.constant 0 : index
    %2 = vector.load %arg3[%c0_1, %c0_2] : memref<32x128xbf16, #tpu.memory_space<vmem>>, vector<32x128xbf16>
    %cst = arith.constant dense<0.000000e+00> : vector<16x128xf32>
    %3 = tpu.matmul %1, %2, %cst {dimension_numbers = #tpu.dot_dimension_numbers<[1], [0], [0], [1], [0, 0, 1, 1], [], []>} : vector<16x32xbf16>, vector<32x128xbf16>, vector<16x128xf32> -> vector<16x128xf32>
    %c0_3 = arith.constant 0 : index
    %c0_4 = arith.constant 0 : index
    %4 = vector.load %arg4[%c0_3, %c0_4] : memref<1x128xf32, #tpu.memory_space<vmem>>, vector<1x128xf32>
    %5 = vector.broadcast %4 : vector<1x128xf32> to vector<16x128xf32>
    %6 = arith.addf %3, %5 : vector<16x128xf32>
    %c0_5 = arith.constant 0 : index
    %c0_6 = arith.constant 0 : index
    %7 = vector.load %arg5[%c0_5, %c0_6] : memref<16x128xf32, #tpu.memory_space<vmem>>, vector<16x128xf32>
    tpu.vector_store %arg5[%c0_5, %c0_6], %6 {strides = array<i32>} : memref<16x128xf32, #tpu.memory_space<vmem>>, vector<16x128xf32>,
    return
  }
  func.func @transform_0(%arg0: i32, %arg1: i32) -> (i32, i32) {
    %c0_i32 = arith.constant 0 : i32
    %c0_i32_0 = arith.constant 0 : i32
    return %arg1, %c0_i32 : i32, i32
  }
  func.func @transform_1(%arg0: i32, %arg1: i32) -> (i32, i32) {
    %c0_i32 = arith.constant 0 : i32
    %c0_i32_0 = arith.constant 0 : i32
    return %c0_i32, %arg0 : i32, i32
  }
  func.func @transform_2(%arg0: i32, %arg1: i32) -> (i32, i32) {
    %c0_i32 = arith.constant 0 : i32
    %c0_i32_0 = arith.constant 0 : i32
    return %c0_i32, %arg0 : i32, i32
  }
  func.func @transform_3(%arg0: i32, %arg1: i32) -> (i32, i32) {
    %c0_i32 = arith.constant 0 : i32
    return %arg1, %arg0 : i32, i32
  }
}

</mosaic_0001>

<bundles_post_ra>
// kernel: transformer_nmt_forward.27
= control target key start
LH: loop header
LB: loop body
LE: loop exit
PB: predicated region body
PF: predicated region fallthrough
CT: control target
= control target key end

     0   :  { %v181_v0 = vmov 0.0   ;;  %vm182_vm0 = vmmov 0   ;;  %vm54_vm1 = vcmask 261120   ;;  %s255_s1 = inlined_call_operand.vmem [shape: bf16[32,32], index: 1, kind: input, shape index: {}]   ;;  %s256_s0 = inlined_call_operand.vmem [shape: bf16[16,32], index: 0, kind: input, shape index: {}]   ;;  %s257_s2 = inlined_call_operand.vmem [shape: f32[1,32], index: 2, kind: input, shape index: {}]   ;;  %s258_s3 = inlined_call_operand.vmem [shape: f32[16,32], index: 3, kind: input, shape index: {}]   ;;  %s259_s4 = inlined_call_operand.vmem [shape: f32[1,32], index: 4, kind: input, shape index: {}]   ;;  %s260_s5 = inlined_call_operand.vmem [shape: f32[1,32], index: 5, kind: input, shape index: {}]   ;;  %s261_s6 = inlined_call_operand.vmem [shape: f32[16,32], index: 6, kind: output, shape index: {}]  }
   0x1   :  { %164 = vmatprep.subr.bf16.mxu0 %v181_v0  ;;  %v174_v1 = vld [vmem:[%s255_s1 + $0x8] sm:$0xff]   ;;  %168 = vmatprep.mubr.msk.bf16.mxu0 %vm182_vm0, %v181_v0  ;;  %v175_v2 = vld [vmem:[%s255_s1] sm:$0xff]  }
   0x2   :  { %165 = vmatpush3.bf16.msra.mxu0 %v174_v1  ;;  %v176_v3 = vld [vmem:[%s256_s0] sm:$0xff]   ;;  %v100_v11 = vld [vmem:[%s258_s3 + $0x8] sm:$0xff] }
   0x3   :  { %166 = vmatprep.subr.bf16.mxu0 %v181_v0  ;;  %v154_v4 = vld [vmem:[%s257_s2] ss:$0 sm:$0xff] }
   0x4   :  { %v99_v6 = vld [vmem:[%s258_s3] sm:$0xff] }
   0x5   :  { %v159_v34 = vld [vmem:[%s259_s4] ss:$0 sm:$0xff] }
   0x6   :  { %167 = vmatpush3.bf16.msra.mxu0 %v175_v2  ;;  %v160_v36 = vld [vmem:[%s260_s5] ss:$0 sm:$0xff] }
   0x9   :  { %169 = vmatmul.mubr.msk.bf16.vlgmr.msra.gmra.mxu0 %vm54_vm1, %v176_v3 }
  0xc9   :  { %v92_v5 = vpop.f32.mrf.mxu0 }
  0xca   :  { %v93_v7 = vadd.f32 %v154_v4, %v92_v5 }
  0xcb   :  { %v170_v8 = vpop.f32.mrf.mxu0 }
  0xcc   :  { %v101_v9 = vadd.f32 %v99_v6, %v93_v7 }
  0xcd   :  { %v95_v10 = vpop.f32.mrf.mxu0 }
  0xce   :  { %v96_v12 = vadd.f32 %v154_v4, %v95_v10  ;;  %v105_v13 = vsel %vm54_vm1, %v101_v9, 0.0 }
  0xcf   :  { %106 = vadd.xlane.f32.xlu0 %v105_v13  ;;  %v171_v14 = vpop.f32.mrf.mxu0 }
  0xd0   :  { %v102_v15 = vadd.f32 %v100_v11, %v96_v12 }
  0xd2   :  { %v108_v16 = vsel %vm54_vm1, %v102_v15, 0.0 }
  0xd3   :  { %109 = vadd.xlane.f32.xlu0 %v108_v16 }
 0x158   :  { %v107_v17 = vpop.xlane.xlu0 %106 }
 0x159   :  { %v112_v18 = vmul.f32 0.03125, %v107_v17 }
 0x15b   :  { %v114_v19 = vsub.f32 %v101_v9, %v112_v18 }
 0x15c   :  { %v110_v20 = vpop.xlane.xlu0 %109 }
 0x15d   :  { %v113_v21 = vmul.f32 0.03125, %v110_v20  ;;  %v116_v22 = vmul.f32 %v114_v19, %v114_v19 }
 0x15f   :  { %v115_v23 = vsub.f32 %v102_v15, %v113_v21  ;;  %v118_v24 = vsel %vm54_vm1, %v116_v22, 0.0 }
 0x160   :  { %119 = vadd.xlane.f32.xlu1 %v118_v24 }
 0x161   :  { %v117_v25 = vmul.f32 %v115_v23, %v115_v23 }
 0x163   :  { %v121_v26 = vsel %vm54_vm1, %v117_v25, 0.0 }
 0x164   :  { %122 = vadd.xlane.f32.xlu1 %v121_v26 }
 0x1e9   :  { %v120_v27 = vpop.xlane.xlu1 %119 }
 0x1ea   :  { %v124_v28 = vmul.f32 0.03125, %v120_v27 }
 0x1ec   :  { %v126_v29 = vadd.f32 1e-05, %v124_v28 }
 0x1ed   :  { %v123_v30 = vpop.xlane.xlu1 %122 }
 0x1ee   :  { %177 = vrsqrt.f32 %v126_v29  ;;  %v125_v31 = vmul.f32 0.03125, %v123_v30 }
 0x1f0   :  { %v127_v32 = vadd.f32 1e-05, %v125_v31 }
 0x1f2   :  { %179 = vrsqrt.f32 %v127_v32 }
 0x1fb   :  { %v178_v33 = vpop.eup %177 }
 0x1fc   :  { %v130_v35 = vmul.f32 %v178_v33, %v114_v19 }
 0x1fe   :  { %v138_v37 = vmul.f32 %v159_v34, %v130_v35 }
 0x1ff   :  { %v180_v38 = vpop.eup %179 }
 0x200   :  { %v146_v39 = vadd.f32 %v160_v36, %v138_v37  ;;  %v131_v40 = vmul.f32 %v180_v38, %v115_v23 }
 0x202   :  { %148 = vst.msk [vmem:[%s261_s6] sm:$0xff] %vm54_vm1, %v146_v39  ;;  %v139_v41 = vmul.f32 %v159_v34, %v131_v40 }
 0x204   :  { %v147_v42 = vadd.f32 %v160_v36, %v139_v41 }
 0x206   :  { %149 = vst.msk [vmem:[%s261_s6 + $0x8] sm:$0xff] %vm54_vm1, %v147_v42 }

// kernel: transformer_nmt_forward.25
= control target key start
LH: loop header
LB: loop body
LE: loop exit
PB: predicated region body
PF: predicated region fallthrough
CT: control target
= control target key end

     0   :  { %v140_v0 = vmov 0.0   ;;  %vm141_vm0 = vmmov 0   ;;  %vm43_vm1 = vcmask 261120   ;;  %vm96_vm2 = vcmask 257024   ;;  %s195_s1 = inlined_call_operand.vmem [shape: bf16[32,96], index: 1, kind: input, shape index: {}]   ;;  %s196_s0 = inlined_call_operand.vmem [shape: f32[16,32], index: 0, kind: input, shape index: {}]   ;;  %s197_s2 = inlined_call_operand.vmem [shape: f32[1,96], index: 2, kind: input, shape index: {}]   ;;  %s198_s3 = inlined_call_operand.vmem [shape: bf16[16,32], index: 3, kind: output, shape index: {0}]   ;;  %s199_s4 = inlined_call_operand.vmem [shape: bf16[16,64], index: 4, kind: output, shape index: {1}]  }
   0x1   :  { %127 = vmatprep.subr.bf16.mxu0 %v140_v0  ;;  %v138_v1 = vld [vmem:[%s195_s1 + $0x8] sm:$0xff]   ;;  %131 = vmatprep.mubr.msk.bf16.mxu0 %vm141_vm0, %v140_v0  ;;  %v139_v2 = vld [vmem:[%s195_s1] sm:$0xff]   ;;  %vm105_vm3 = vcmask 519168  }
   0x2   :  { %128 = vmatpush3.bf16.msra.mxu0 %v138_v1  ;;  %v17_v3 = vld [vmem:[%s196_s0] sm:$0xff]  ;;  %v18_v4 = vld [vmem:[%s196_s0 + $0x8] sm:$0xff]  ;;  %s142_s0 = smov 96  }
   0x3   :  { %129 = vmatprep.subr.bf16.mxu0 %v140_v0  ;;  %v19_v5 = vpack.c.bf16 %v18_v4, %v17_v3  ;;  %v116_v6 = vld [vmem:[%s197_s2] ss:$0 sm:$0xff] }
   0x6   :  { %130 = vmatpush3.bf16.msra.mxu0 %v139_v2 }
   0x9   :  { %132 = vmatmul.mubr.msk.bf16.vlgmr.msra.gmra.mxu0 %vm43_vm1, %v19_v5 }
  0xc9   :  { %v81_v7 = vpop.f32.mrf.mxu0 }
  0xca   :  { %v82_v8 = vadd.f32 %v116_v6, %v81_v7 }
  0xcb   :  { %v133_v9 = vpop.f32.mrf.mxu0 }
  0xcc   :  { %v122_v10 = vpack.c.bf16 %v82_v8, %v82_v8 }
  0xcd   :  { %v84_v11 = vpop.f32.mrf.mxu0 }
  0xce   :  { %97 = vst.msk [vmem:[%s198_s3] sm:$0xf] %vm96_vm2, %v122_v10  ;;  %v85_v12 = vadd.f32 %v116_v6, %v84_v11  ;;  %99 = vrot.lane.b32.xlu0 %v122_v10, %s142_s0 }
  0xcf   :  { %v134_v13 = vpop.f32.mrf.mxu0 }
  0xd0   :  { %v123_v14 = vpack.c.bf16 %v85_v12, %v85_v12 }
  0xd2   :  { %98 = vst.msk [vmem:[%s198_s3 + $0x4] sm:$0xf] %vm96_vm2, %v123_v14  ;;  %101 = vrot.lane.b32.xlu0 %v123_v14, %s142_s0 }
 0x140   :  { %v100_v15 = vpop.permute.xlu0 %99 }
 0x141   :  { %106 = vst.msk [vmem:[%s199_s4] sm:$0xf] %vm105_vm3, %v100_v15 }
 0x144   :  { %v102_v16 = vpop.permute.xlu0 %101 }
 0x145   :  { %107 = vst.msk [vmem:[%s199_s4 + $0x4] sm:$0xf] %vm105_vm3, %v102_v16 }

// kernel: transformer_nmt_forward.28
= control target key start
LH: loop header
LB: loop body
LE: loop exit
PB: predicated region body
PF: predicated region fallthrough
CT: control target
= control target key end

     0   :  { %vm31_vm0 = vcmask 261120   ;;  %v310_v0 = vmov 0.0   ;;  %vm311_vm1 = vmmov 0   ;;  %vm142_vm2 = vcmask 523264   ;;  %s405_s1 = inlined_call_operand.vmem [shape: bf16[32,64], index: 1, kind: input, shape index: {}]   ;;  %s406_s0 = inlined_call_operand.vmem [shape: f32[16,32], index: 0, kind: input, shape index: {}]   ;;  %s407_s3 = inlined_call_operand.vmem [shape: bf16[64,32], index: 3, kind: input, shape index: {}]   ;;  %s408_s2 = inlined_call_operand.vmem [shape: f32[1,64], index: 2, kind: input, shape index: {}]   ;;  %s409_s4 = inlined_call_operand.vmem [shape: f32[1,32], index: 4, kind: input, shape index: {}]   ;;  %s410_s5 = inlined_call_operand.vmem [shape: f32[1,32], index: 5, kind: input, shape index: {}]   ;;  %s411_s6 = inlined_call_operand.vmem [shape: f32[1,32], index: 6, kind: input, shape index: {}]   ;;  %s412_s7 = inlined_call_operand.vmem [shape: f32[16,32], index: 7, kind: output, shape index: {}]  }
   0x1   :  { %278 = vmatprep.subr.bf16.mxu0 %v310_v0  ;;  %v300_v1 = vld [vmem:[%s405_s1 + $0x8] sm:$0xff]   ;;  %282 = vmatprep.mubr.msk.bf16.mxu0 %vm311_vm1, %v310_v0  ;;  %32 = vst.msk [vmem:[#allocation2] sm:$0xff] %vm31_vm0, %v310_v0  ;;  %33 = vst.msk [vmem:[#allocation2 + $0x8] sm:$0xff] %vm31_vm0, %v310_v0  ;;  %v301_v2 = vld [vmem:[%s405_s1] sm:$0xff]  }
   0x2   :  { %286 = vmatprep.subr.bf16.mxu1 %v310_v0  ;;  %294 = vmatprep.mubr.msk.bf16.mxu1 %vm311_vm1, %v310_v0  ;;  %v34_v3 = vld [vmem:[%s406_s0] sm:$0xff]  ;;  %v35_v4 = vld [vmem:[%s406_s0 + $0x8] sm:$0xff]  ;;  %v302_v5 = vld [vmem:[%s407_s3 + $0x18] sm:$0xff]  }
   0x3   :  { %279 = vmatpush3.bf16.msra.mxu0 %v300_v1  ;;  %v36_v6 = vpack.c.bf16 %v35_v4, %v34_v3  ;;  %287 = vmatpush3.bf16.msra.mxu1 %v302_v5  ;;  %v303_v7 = vld [vmem:[%s407_s3 + $0x10] sm:$0xff]   ;;  %v304_v8 = vld [vmem:[%s407_s3 + $0x8] sm:$0xff]   ;;  %v305_v9 = vld [vmem:[%s407_s3] sm:$0xff]  }
   0x4   :  { %280 = vmatprep.subr.bf16.mxu0 %v310_v0  ;;  %288 = vmatprep.subr.bf16.mxu1 %v310_v0  ;;  %v258_v10 = vld [vmem:[%s408_s2] ss:$0 sm:$0xff] }
   0x5   :  { %v267_v28 = vld [vmem:[%s409_s4] ss:$0 sm:$0xff] }
   0x6   :  { %v268_v54 = vld [vmem:[%s410_s5] ss:$0 sm:$0xff] }
   0x7   :  { %281 = vmatpush3.bf16.msra.mxu0 %v301_v2  ;;  %289 = vmatpush3.bf16.msra.mxu1 %v303_v7  ;;  %v269_v56 = vld [vmem:[%s411_s6] ss:$0 sm:$0xff] }
   0x8   :  { %290 = vmatprep.subr.bf16.mxu1 %v310_v0  ;;  %v107_v20 = vld [vmem:[#allocation2] sm:$0xff]  ;;  %v108_v24 = vld [vmem:[#allocation2 + $0x8] sm:$0xff] }
   0xa   :  { %283 = vmatmul.mubr.msk.bf16.vlgmr.msra.gmra.mxu0 %vm31_vm0, %v36_v6 }
   0xb   :  { %291 = vmatpush3.bf16.msra.mxu1 %v304_v8 }
   0xc   :  { %292 = vmatprep.subr.bf16.mxu1 %v310_v0 }
   0xf   :  { %293 = vmatpush3.bf16.msra.mxu1 %v305_v9 }
  0xca   :  { %v98_v11 = vpop.f32.mrf.mxu0 }
  0xcb   :  { %v99_v13 = vadd.f32 %v258_v10, %v98_v11 }
  0xcc   :  { %v284_v12 = vpop.f32.mrf.mxu0 }
  0xcd   :  { %v105_v17 = vmax.f32 %v99_v13, 0.0 }
  0xce   :  { %v101_v14 = vpop.f32.mrf.mxu0 }
  0xcf   :  { %v102_v15 = vadd.f32 %v258_v10, %v101_v14 }
  0xd0   :  { %v285_v16 = vpop.f32.mrf.mxu0 }
  0xd1   :  { %v106_v18 = vmax.f32 %v102_v15, 0.0 }
  0xd3   :  { %v109_v19 = vpack.c.bf16 %v106_v18, %v105_v17 }
  0xd5   :  { %295 = vmatmul.mubr.msk.bf16.vlgmr.msra.gmra.mxu1 %vm142_vm2, %v109_v19 }
 0x195   :  { %v180_v21 = vpop.f32.mrf.mxu1 }
 0x196   :  { %v187_v22 = vadd.f32 %v180_v21, %v107_v20 }
 0x197   :  { %v296_v23 = vpop.f32.mrf.mxu1 }
 0x198   :  { %189 = vst.msk [vmem:[#allocation2] sm:$0xff] %vm31_vm0, %v187_v22 }
 0x199   :  { %v183_v25 = vpop.f32.mrf.mxu1 }
 0x19a   :  { %v188_v26 = vadd.f32 %v183_v25, %v108_v24 }
 0x19b   :  { %v297_v27 = vpop.f32.mrf.mxu1 }
 0x19c   :  { %190 = vst.msk [vmem:[#allocation2 + $0x8] sm:$0xff] %vm31_vm0, %v188_v26 }
 0x19f   :  { %v194_v29 = vld [vmem:[#allocation2] sm:$0xff] }
 0x1a0   :  { %v203_v30 = vadd.f32 %v267_v28, %v194_v29 }
 0x1a2   :  { %v205_v31 = vadd.f32 %v203_v30, %v34_v3 }
 0x1a3   :  { %v195_v32 = vld [vmem:[#allocation2 + $0x8] sm:$0xff] }
 0x1a4   :  { %v209_v33 = vsel %vm31_vm0, %v205_v31, 0.0  ;;  %v204_v34 = vadd.f32 %v267_v28, %v195_v32 }
 0x1a5   :  { %210 = vadd.xlane.f32.xlu0 %v209_v33 }
 0x1a6   :  { %v206_v35 = vadd.f32 %v204_v34, %v35_v4 }
 0x1a8   :  { %v212_v36 = vsel %vm31_vm0, %v206_v35, 0.0 }
 0x1a9   :  { %213 = vadd.xlane.f32.xlu0 %v212_v36 }
 0x22e   :  { %v211_v37 = vpop.xlane.xlu0 %210 }
 0x22f   :  { %v216_v38 = vmul.f32 0.03125, %v211_v37 }
 0x231   :  { %v218_v39 = vsub.f32 %v205_v31, %v216_v38 }
 0x232   :  { %v214_v40 = vpop.xlane.xlu0 %213 }
 0x233   :  { %v217_v41 = vmul.f32 0.03125, %v214_v40  ;;  %v220_v42 = vmul.f32 %v218_v39, %v218_v39 }
 0x235   :  { %v219_v43 = vsub.f32 %v206_v35, %v217_v41  ;;  %v222_v44 = vsel %vm31_vm0, %v220_v42, 0.0 }
 0x236   :  { %223 = vadd.xlane.f32.xlu1 %v222_v44 }
 0x237   :  { %v221_v45 = vmul.f32 %v219_v43, %v219_v43 }
 0x239   :  { %v225_v46 = vsel %vm31_vm0, %v221_v45, 0.0 }
 0x23a   :  { %226 = vadd.xlane.f32.xlu1 %v225_v46 }
 0x2bf   :  { %v224_v47 = vpop.xlane.xlu1 %223 }
 0x2c0   :  { %v228_v48 = vmul.f32 0.03125, %v224_v47 }
 0x2c2   :  { %v230_v49 = vadd.f32 1e-05, %v228_v48 }
 0x2c3   :  { %v227_v50 = vpop.xlane.xlu1 %226 }
 0x2c4   :  { %306 = vrsqrt.f32 %v230_v49  ;;  %v229_v51 = vmul.f32 0.03125, %v227_v50 }
 0x2c6   :  { %v231_v52 = vadd.f32 1e-05, %v229_v51 }
 0x2c8   :  { %308 = vrsqrt.f32 %v231_v52 }
 0x2d1   :  { %v307_v53 = vpop.eup %306 }
 0x2d2   :  { %v234_v55 = vmul.f32 %v307_v53, %v218_v39 }
 0x2d4   :  { %v242_v57 = vmul.f32 %v268_v54, %v234_v55 }
 0x2d5   :  { %v309_v58 = vpop.eup %308 }
 0x2d6   :  { %v250_v59 = vadd.f32 %v269_v56, %v242_v57  ;;  %v235_v60 = vmul.f32 %v309_v58, %v219_v43 }
 0x2d8   :  { %252 = vst.msk [vmem:[%s412_s7] sm:$0xff] %vm31_vm0, %v250_v59  ;;  %v243_v61 = vmul.f32 %v268_v54, %v235_v60 }
 0x2da   :  { %v251_v62 = vadd.f32 %v269_v56, %v243_v61 }
 0x2dc   :  { %253 = vst.msk [vmem:[%s412_s7 + $0x8] sm:$0xff] %vm31_vm0, %v251_v62 }

// kernel: transformer_nmt_forward.26
= control target key start
LH: loop header
LB: loop body
LE: loop exit
PB: predicated region body
PF: predicated region fallthrough
CT: control target
= control target key end

     0   :  { %s949_s9 = smov 0   ;;  %s951_s10 = smov 0   ;;  %s1053_s0 = inlined_call_operand.vmem [shape: bf16[2,8,32], index: 0, kind: input, shape index: {}]   ;;  %s1054_s1 = inlined_call_operand.vmem [shape: bf16[2,8,64], index: 1, kind: input, shape index: {}]   ;;  %s1055_s2 = inlined_call_operand.vmem [shape: bf16[2,8,32], index: 2, kind: output, shape index: {}]  }
   0x1   :  { %s953_s11 = smov 0  }
   0x2 LB: > { %s24_s12 = sadd.s32 1, %s916_s10  ;;  %p758_p0 = scmp.ge.s32.totalorder %s920_s11, 1  ;;  %s920_s11 = sphi %s953_s11, %s12_s11   ;;  %s916_s10 = sphi %s951_s10, %s1057_s10   ;;  %s912_s9 = sphi %s949_s9, %s1056_s9  }
   0x3   : > { %p26_p1 = scmp.ge.s32.totalorder %s24_s12, 2  ;;  %p139_p2 = scmp.lt.s32.totalorder %s920_s11, 3 }
   0x5   : > { %s1059_s12 = smov (%p26_p1, %s24_s12), 0  ;;  %p140_p3 = pnand %p758_p0, %p139_p2 }
   0x6   : > { %p169_p4 = scmp.lt.s32.totalorder (!%p140_p3), %s912_s9, 1  ;;  %s924_s20 = smov (!%p140_p3), 96  }
   0x7   : > { %143 = sbr.rel (%p140_p3) target bundleno = 1377 (0x561), region = 28  ;;  %s925_s21 = smov (!%p140_p3), 120  }
   0x8   : > { %s926_s22 = smov (!%p140_p3), 112   ;;  %s927_s23 = smov (!%p140_p3), 104  }
   0x9   : > { %s928_s27 = smov (!%p140_p3), 88   ;;  %s929_s28 = smov (!%p140_p3), 72  }
   0xa   : > { %s930_s29 = smov (!%p140_p3), 80   ;;  %s931_s30 = smov (!%p140_p3), 8  }
   0xb   : > { %s932_s3 = smov (!%p140_p3), 16   ;;  %s933_s4 = smov (!%p140_p3), 24  }
   0xc   : > { %v922_v0 = vmov 0.0   ;;  %vm923_vm0 = vmmov 0   ;;  %s1061_s9 = smov (!%p169_p4, %s912_s9), 1  ;;  %vm190_vm1 = vcmask 64512   ;;  %vm258_vm2 = vcmask 1043456  }
   0xd   : > { %796 = vmatprep.subr.bf16.mxu0 %v922_v0  ;;  %798 = vmatprep.mubr.msk.bf16.mxu0 %vm923_vm0, %v922_v0  ;;  %s973_s13 = sshll.u32 %s1061_s9, 2  ;;  %vm303_vm3 = vcmask 60416   ;;  %vm426_vm4 = vcmask 126016   ;;  %vm546_vm5 = vcmask 191616   ;;  %vm666_vm6 = vcmask 257216  }
   0xe   : > { %802 = vmatprep.subr.bf16.mxu1 %v922_v0  ;;  %804 = vmatprep.mubr.msk.bf16.mxu1 %vm923_vm0, %v922_v0  ;;  %s179_s16 = scalar_lea.vmem %s1054_s1, %s973_s13  ;;  %s175_s19 = scalar_lea.vmem %s1053_s0, %s973_s13 }
   0xf   : > { %v189_v1 = vld [vmem:[%s179_s16] sm:$0xf]  ;;  %s1017_s26 = scalar_lea.vmem %s1055_s2, %s973_s13 }
  0x10   : > { %v195_v2 = vsel %vm190_vm1, %v189_v1, 0  ;;  %v188_v3 = vld [vmem:[%s175_s19] sm:$0xf]  ;;  %v989_v10 = vcombine.low %v189_v1, %v189_v1 }
  0x11   : > { %797 = vmatpush3.bf16.xpose.msra.mxu0 %v195_v2  ;;  %v765_v11 = vcombine.low %v188_v3, %v188_v3 }
  0x12   : > { %814 = vmatprep.subr.bf16.mxu0 %v922_v0  ;;  %253 = vrot.lane.b32.xlu1 %v989_v10, %s924_s20 }
  0x16   : > { %310 = vrot.lane.b32.xlu1 %v989_v10, %s925_s21 }
  0x18   : > { %799 = vmatmul.mubr.msk.bf16.vlgmr.msra.gmra.mxu0 %vm190_vm1, %v188_v3 }
  0x19   : > { %816 = vmatprep.mubr.msk.bf16.mxu0 %vm923_vm0, %v922_v0 }
  0x1a   : > { %430 = vrot.lane.b32.xlu1 %v989_v10, %s926_s22 }
  0x1e   : > { %428 = vrot.lane.b32.xlu1 %v765_v11, %s926_s22 }
  0x22   : > { %550 = vrot.lane.b32.xlu1 %v989_v10, %s927_s23 }
  0x26   : > { %548 = vrot.lane.b32.xlu1 %v765_v11, %s927_s23 }
  0x84   : > { %v254_v17 = vpop.permute.xlu1 %253 }
  0x85   : > { %v260_v18 = vsel %vm258_vm2, %v254_v17, 0 }
  0x86   : > { %803 = vmatpush3.bf16.msra.mxu1 %v260_v18 }
  0x87   : > { %808 = vmatprep.subr.bf16.mxu1 %v922_v0 }
  0x88   : > { %v311_v21 = vpop.permute.xlu1 %310 }
  0x89   : > { %v316_v23 = vsel %vm190_vm1, %v311_v21, 0 }
  0x8c   : > { %v431_v25 = vpop.permute.xlu1 %430 }
  0x8d   : > { %v436_v28 = vsel %vm190_vm1, %v431_v25, 0 }
  0x90   : > { %v429_v27 = vpop.permute.xlu1 %428 }
  0x94   : > { %v551_v29 = vpop.permute.xlu1 %550 }
  0x95   : > { %v556_v30 = vsel %vm190_vm1, %v551_v29, 0 }
  0x98   : > { %v549_v31 = vpop.permute.xlu1 %548 }
  0xd8   : > { %v231_v4 = vpop.f32.mrf.mxu0 }
  0xd9   : > { %v237_v5 = vmul.f32 0.35355338, %v231_v4 }
  0xda   : > { %v800_v6 = vpop.f32.mrf.mxu0 }
  0xdb   : > { %v238_v7 = vsel %vm190_vm1, %v237_v5, -inf }
  0xdc   : > { %239 = vmax.xlane.f32.xlu0 %v238_v7  ;;  %v234_v8 = vpop.f32.mrf.mxu0 }
  0xde   : > { %v801_v9 = vpop.f32.mrf.mxu0 }
 0x165   : > { %v240_v12 = vpop.xlane.xlu0 %239 }
 0x166   : > { %v241_v13 = vsub.f32 %v237_v5, %v240_v12 }
 0x168   : > { %v242_v14 = vmul.f32 1.442695, %v241_v13 }
 0x16a   : > { %882 = vpow2.f32 %v242_v14 }
 0x177   : > { %v883_v15 = vpop.eup %882 }
 0x178   : > { %v244_v16 = vsel %vm190_vm1, %v883_v15, 0.0 }
 0x179   : > { %245 = vadd.xlane.f32.xlu0 %v244_v16 }
 0x18f   : > { %308 = vrot.lane.b32.xlu0 %v765_v11, %s925_s21 }
 0x202   : > { %v246_v19 = vpop.xlane.xlu0 %245 }
 0x203   : > { %884 = vrcp.f32 %v246_v19 }
 0x206   : > { %v309_v26 = vpop.permute.xlu0 %308 }
 0x210   : > { %v885_v20 = vpop.eup %884 }
 0x211   : > { %v248_v22 = vmul.f32 %v885_v20, %v883_v15 }
 0x213   : > { %v249_v24 = vpack.c.bf16 %v248_v22, %v248_v22 }
 0x215   : > { %805 = vmatmul.mubr.msk.bf16.vlgmr.msra.gmra.mxu1 %vm190_vm1, %v249_v24 }
 0x216   : > { %809 = vmatpush3.bf16.xpose.msra.mxu1 %v316_v23  ;;  %810 = vmatprep.mubr.msk.bf16.mxu1 %vm923_vm0, %v922_v0 }
 0x217   : > { %820 = vmatprep.subr.bf16.mxu1 %v922_v0 }
 0x21d   : > { %811 = vmatmul.mubr.msk.bf16.vlgmr.msra.gmra.mxu1 %vm190_vm1, %v309_v26 }
 0x21e   : > { %821 = vmatpush3.bf16.xpose.msra.mxu1 %v436_v28  ;;  %822 = vmatprep.mubr.msk.bf16.mxu1 %vm923_vm0, %v922_v0 }
 0x21f   : > { %832 = vmatprep.subr.bf16.mxu1 %v922_v0 }
 0x225   : > { %823 = vmatmul.mubr.msk.bf16.vlgmr.msra.gmra.mxu1 %vm190_vm1, %v429_v27 }
 0x226   : > { %833 = vmatpush3.bf16.xpose.msra.mxu1 %v556_v30  ;;  %834 = vmatprep.mubr.msk.bf16.mxu1 %vm923_vm0, %v922_v0 }
 0x22d   : > { %835 = vmatmul.mubr.msk.bf16.vlgmr.msra.gmra.mxu1 %vm190_vm1, %v549_v31 }
 0x2d5   : > { %v296_v32 = vpop.f32.mrf.mxu1 }
 0x2d6   : > { %v302_v33 = vpack.c.bf16 %v296_v32, %v296_v32 }
 0x2d7   : > { %v806_v34 = vpop.f32.mrf.mxu1 }
 0x2d8   : > { %304 = vst.msk [vmem:[%s1017_s26] sm:$0xf] %vm303_vm3, %v302_v33 }
 0x2d9   : > { %v299_v35 = vpop.f32.mrf.mxu1 }
 0x2db   : > { %v807_v36 = vpop.f32.mrf.mxu1 }
 0x2dd   : > { %v352_v37 = vpop.f32.mrf.mxu1 }
 0x2de   : > { %v358_v38 = vmul.f32 0.35355338, %v352_v37 }
 0x2df   : > { %v812_v39 = vpop.f32.mrf.mxu1 }
 0x2e0   : > { %v359_v40 = vsel %vm190_vm1, %v358_v38, -inf }
 0x2e1   : > { %360 = vmax.xlane.f32.xlu1 %v359_v40  ;;  %v355_v41 = vpop.f32.mrf.mxu1 }
 0x2e3   : > { %v813_v42 = vpop.f32.mrf.mxu1 }
 0x2e5   : > { %v472_v43 = vpop.f32.mrf.mxu1 }
 0x2e6   : > { %v478_v44 = vmul.f32 0.35355338, %v472_v43 }
 0x2e7   : > { %v824_v45 = vpop.f32.mrf.mxu1 }
 0x2e8   : > { %v479_v46 = vsel %vm190_vm1, %v478_v44, -inf }
 0x2e9   : > { %480 = vmax.xlane.f32.xlu0 %v479_v46  ;;  %v475_v47 = vpop.f32.mrf.mxu1 }
 0x2eb   : > { %v825_v48 = vpop.f32.mrf.mxu1 }
 0x2ed   : > { %v592_v49 = vpop.f32.mrf.mxu1 }
 0x2ee   : > { %v598_v50 = vmul.f32 0.35355338, %v592_v49 }
 0x2ef   : > { %v836_v51 = vpop.f32.mrf.mxu1 }
 0x2f0   : > { %v599_v52 = vsel %vm190_vm1, %v598_v50, -inf }
 0x2f1   : > { %600 = vmax.xlane.f32.xlu1 %v599_v52  ;;  %v595_v53 = vpop.f32.mrf.mxu1 }
 0x2f3   : > { %v837_v54 = vpop.f32.mrf.mxu1 }
 0x302   : > { %371 = vrot.lane.b32.xlu1 %v989_v10, %s928_s27 }
 0x36a   : > { %v361_v55 = vpop.xlane.xlu1 %360 }
 0x36b   : > { %v362_v56 = vsub.f32 %v358_v38, %v361_v55 }
 0x36d   : > { %v363_v57 = vmul.f32 1.442695, %v362_v56 }
 0x36f   : > { %886 = vpow2.f32 %v363_v57 }
 0x372   : > { %v481_v58 = vpop.xlane.xlu0 %480 }
 0x373   : > { %v482_v59 = vsub.f32 %v478_v44, %v481_v58 }
 0x375   : > { %v483_v60 = vmul.f32 1.442695, %v482_v59 }
 0x377   : > { %888 = vpow2.f32 %v483_v60 }
 0x37a   : > { %v601_v61 = vpop.xlane.xlu1 %600 }
 0x37b   : > { %v602_v62 = vsub.f32 %v598_v50, %v601_v61 }
 0x37c   : > { %v887_v63 = vpop.eup %886 }
 0x37d   : > { %v603_v1 = vmul.f32 1.442695, %v602_v62  ;;  %v365_v2 = vsel %vm190_vm1, %v887_v63, 0.0 }
 0x37e   : > { %366 = vadd.xlane.f32.xlu0 %v365_v2  ;;  %v372_v3 = vpop.permute.xlu1 %371 }
 0x37f   : > { %890 = vpow2.f32 %v603_v1  ;;  %v377_v4 = vsel %vm258_vm2, %v372_v3, 0 }
 0x380   : > { %815 = vmatpush3.bf16.msra.mxu0 %v377_v4 }
 0x381   : > { %826 = vmatprep.subr.bf16.mxu0 %v922_v0 }
 0x384   : > { %v889_v5 = vpop.eup %888 }
 0x385   : > { %v485_v6 = vsel %vm190_vm1, %v889_v5, 0.0 }
 0x386   : > { %486 = vadd.xlane.f32.xlu1 %v485_v6 }
 0x38c   : > { %v891_v7 = vpop.eup %890 }
 0x38d   : > { %v605_v8 = vsel %vm190_vm1, %v891_v7, 0.0 }
 0x38e   : > { %606 = vadd.xlane.f32.xlu0 %v605_v8 }
 0x397   : > { %611 = vrot.lane.b32.xlu1 %v989_v10, %s929_s28 }
 0x3a4   : > { %491 = vrot.lane.b32.xlu0 %v989_v10, %s930_s29 }
 0x407   : > { %v367_v9 = vpop.xlane.xlu0 %366 }
 0x408   : > { %892 = vrcp.f32 %v367_v9 }
 0x40f   : > { %v487_v11 = vpop.xlane.xlu1 %486 }
 0x410   : > { %894 = vrcp.f32 %v487_v11 }
 0x413   : > { %v612_v10 = vpop.permute.xlu1 %611 }
 0x414   : > { %v617_v21 = vsel %vm258_vm2, %v612_v10, 0 }
 0x415   : > { %v893_v12 = vpop.eup %892 }
 0x416   : > { %v369_v13 = vmul.f32 %v893_v12, %v887_v63 }
 0x417   : > { %v607_v14 = vpop.xlane.xlu0 %606 }
 0x418   : > { %896 = vrcp.f32 %v607_v14  ;;  %v370_v15 = vpack.c.bf16 %v369_v13, %v369_v13 }
 0x41a   : > { %817 = vmatmul.mubr.msk.bf16.vlgmr.msra.gmra.mxu0 %vm190_vm1, %v370_v15 }
 0x41b   : > { %v492_v16 = vpop.permute.xlu0 %491  ;;  %828 = vmatprep.mubr.msk.bf16.mxu0 %vm923_vm0, %v922_v0 }
 0x41c   : > { %v497_v17 = vsel %vm258_vm2, %v492_v16, 0 }
 0x41d   : > { %v895_v18 = vpop.eup %894  ;;  %827 = vmatpush3.bf16.msra.mxu0 %v497_v17 }
 0x41e   : > { %v489_v19 = vmul.f32 %v895_v18, %v889_v5  ;;  %838 = vmatprep.subr.bf16.mxu0 %v922_v0 }
 0x420   : > { %v490_v20 = vpack.c.bf16 %v489_v19, %v489_v19 }
 0x422   : > { %829 = vmatmul.mubr.msk.bf16.vlgmr.msra.gmra.mxu0 %vm190_vm1, %v490_v20 }
 0x423   : > { %839 = vmatpush3.bf16.msra.mxu0 %v617_v21  ;;  %840 = vmatprep.mubr.msk.bf16.mxu0 %vm923_vm0, %v922_v0 }
 0x425   : > { %v897_v22 = vpop.eup %896 }
 0x426   : > { %v609_v23 = vmul.f32 %v897_v22, %v891_v7 }
 0x428   : > { %v610_v24 = vpack.c.bf16 %v609_v23, %v609_v23 }
 0x42a   : > { %841 = vmatmul.mubr.msk.bf16.vlgmr.msra.gmra.mxu0 %vm190_vm1, %v610_v24 }
 0x4da   : > { %v413_v25 = vpop.f32.mrf.mxu0 }
 0x4db   : > { %v777_v26 = vpack.c.bf16 %v413_v25, %v413_v25 }
 0x4dc   : > { %v818_v27 = vpop.f32.mrf.mxu0 }
 0x4dd   : > { %423 = vrot.lane.b32.xlu1 %v777_v26, %s931_s30 }
 0x4de   : > { %v416_v28 = vpop.f32.mrf.mxu0 }
 0x4e0   : > { %v819_v29 = vpop.f32.mrf.mxu0 }
 0x4e2   : > { %v533_v30 = vpop.f32.mrf.mxu0 }
 0x4e3   : > { %v778_v31 = vpack.c.bf16 %v533_v30, %v533_v30 }
 0x4e4   : > { %v830_v32 = vpop.f32.mrf.mxu0 }
 0x4e5   : > { %543 = vrot.lane.b32.xlu0 %v778_v31, %s932_s3 }
 0x4e6   : > { %v536_v0 = vpop.f32.mrf.mxu0 }
 0x4e8   : > { %v831_v33 = vpop.f32.mrf.mxu0 }
 0x4ea   : > { %v653_v34 = vpop.f32.mrf.mxu0 }
 0x4eb   : > { %v779_v35 = vpack.c.bf16 %v653_v34, %v653_v34 }
 0x4ec   : > { %v842_v36 = vpop.f32.mrf.mxu0 }
 0x4ed   : > { %663 = vrot.lane.b32.xlu1 %v779_v35, %s933_s4 }
 0x4ee   : > { %v656_v37 = vpop.f32.mrf.mxu0 }
 0x4f0   : > { %v843_v38 = vpop.f32.mrf.mxu0 }
 0x54f   : > { %v424_v39 = vpop.permute.xlu1 %423 }
 0x550   : > { %427 = vst.msk [vmem:[%s1017_s26] sm:$0xf] %vm426_vm4, %v424_v39 }
 0x557   : > { %v544_v40 = vpop.permute.xlu0 %543 }
 0x558   : > { %547 = vst.msk [vmem:[%s1017_s26] sm:$0xf] %vm546_vm5, %v544_v40 }
 0x55f   : > { %v664_v41 = vpop.permute.xlu1 %663 }
 0x560   : > { %667 = vst.msk [vmem:[%s1017_s26] sm:$0xf] %vm666_vm6, %v664_v41 }
 0x561 PF: > { %s12_s11 = sadd.s32 1, %s920_s11   ;;  %s1056_s9 = smov %s916_s10 }
 0x562   : > { %p9_p5 = scmp.ge.s32.totalorder %s12_s11, 4   ;;  %s1057_s10 = smov %s1059_s12 }
 0x564   :  { %11 = sbr.rel (!%p9_p5) target bundleno = 2 (0x2), region = 61 }

// kernel: transformer_nmt_forward.37
= control target key start
LH: loop header
LB: loop body
LE: loop exit
PB: predicated region body
PF: predicated region fallthrough
CT: control target
= control target key end

     0   :  { %v124_v0 = vmov 0.0   ;;  %vm125_vm0 = vmmov 0   ;;  %vm41_vm1 = vcmask 261120   ;;  %vm94_vm2 = vcmask 519168   ;;  %s167_s1 = inlined_call_operand.vmem [shape: bf16[32,64], index: 1, kind: input, shape index: {}]   ;;  %s168_s0 = inlined_call_operand.vmem [shape: f32[16,32], index: 0, kind: input, shape index: {}]   ;;  %s169_s2 = inlined_call_operand.vmem [shape: f32[1,64], index: 2, kind: input, shape index: {}]   ;;  %s170_s3 = inlined_call_operand.vmem [shape: bf16[16,64], index: 3, kind: output, shape index: {}]  }
   0x1   :  { %112 = vmatprep.subr.bf16.mxu0 %v124_v0  ;;  %v122_v1 = vld [vmem:[%s167_s1 + $0x8] sm:$0xff]   ;;  %116 = vmatprep.mubr.msk.bf16.mxu0 %vm125_vm0, %v124_v0  ;;  %v123_v2 = vld [vmem:[%s167_s1] sm:$0xff]  }
   0x2   :  { %113 = vmatpush3.bf16.msra.mxu0 %v122_v1  ;;  %v15_v3 = vld [vmem:[%s168_s0] sm:$0xff]  ;;  %v16_v4 = vld [vmem:[%s168_s0 + $0x8] sm:$0xff] }
   0x3   :  { %114 = vmatprep.subr.bf16.mxu0 %v124_v0  ;;  %v17_v5 = vpack.c.bf16 %v16_v4, %v15_v3  ;;  %v101_v6 = vld [vmem:[%s169_s2] ss:$0 sm:$0xff] }
   0x6   :  { %115 = vmatpush3.bf16.msra.mxu0 %v123_v2 }
   0x9   :  { %117 = vmatmul.mubr.msk.bf16.vlgmr.msra.gmra.mxu0 %vm41_vm1, %v17_v5 }
  0xc9   :  { %v79_v7 = vpop.f32.mrf.mxu0 }
  0xca   :  { %v80_v8 = vadd.f32 %v101_v6, %v79_v7 }
  0xcb   :  { %v118_v9 = vpop.f32.mrf.mxu0 }
  0xcc   :  { %v107_v10 = vpack.c.bf16 %v80_v8, %v80_v8 }
  0xcd   :  { %v82_v11 = vpop.f32.mrf.mxu0 }
  0xce   :  { %95 = vst.msk [vmem:[%s170_s3] sm:$0xf] %vm94_vm2, %v107_v10  ;;  %v83_v12 = vadd.f32 %v101_v6, %v82_v11 }
  0xcf   :  { %v119_v13 = vpop.f32.mrf.mxu0 }
  0xd0   :  { %v108_v14 = vpack.c.bf16 %v83_v12, %v83_v12 }
  0xd2   :  { %96 = vst.msk [vmem:[%s170_s3 + $0x4] sm:$0xf] %vm94_vm2, %v108_v14 }

// kernel: transformer_nmt_forward.36
= control target key start
LH: loop header
LB: loop body
LE: loop exit
PB: predicated region body
PF: predicated region fallthrough
CT: control target
= control target key end

     0   :  { %v124_v0 = vmov 0.0   ;;  %vm125_vm0 = vmmov 0   ;;  %vm41_vm1 = vcmask 261120   ;;  %vm94_vm2 = vcmask 257024   ;;  %s167_s1 = inlined_call_operand.vmem [shape: bf16[32,32], index: 1, kind: input, shape index: {}]   ;;  %s168_s0 = inlined_call_operand.vmem [shape: f32[16,32], index: 0, kind: input, shape index: {}]   ;;  %s169_s2 = inlined_call_operand.vmem [shape: f32[1,32], index: 2, kind: input, shape index: {}]   ;;  %s170_s3 = inlined_call_operand.vmem [shape: bf16[16,32], index: 3, kind: output, shape index: {}]  }
   0x1   :  { %112 = vmatprep.subr.bf16.mxu0 %v124_v0  ;;  %v122_v1 = vld [vmem:[%s167_s1 + $0x8] sm:$0xff]   ;;  %116 = vmatprep.mubr.msk.bf16.mxu0 %vm125_vm0, %v124_v0  ;;  %v123_v2 = vld [vmem:[%s167_s1] sm:$0xff]  }
   0x2   :  { %113 = vmatpush3.bf16.msra.mxu0 %v122_v1  ;;  %v15_v3 = vld [vmem:[%s168_s0] sm:$0xff]  ;;  %v16_v4 = vld [vmem:[%s168_s0 + $0x8] sm:$0xff] }
   0x3   :  { %114 = vmatprep.subr.bf16.mxu0 %v124_v0  ;;  %v17_v5 = vpack.c.bf16 %v16_v4, %v15_v3  ;;  %v101_v6 = vld [vmem:[%s169_s2] ss:$0 sm:$0xff] }
   0x6   :  { %115 = vmatpush3.bf16.msra.mxu0 %v123_v2 }
   0x9   :  { %117 = vmatmul.mubr.msk.bf16.vlgmr.msra.gmra.mxu0 %vm41_vm1, %v17_v5 }
  0xc9   :  { %v79_v7 = vpop.f32.mrf.mxu0 }
  0xca   :  { %v80_v8 = vadd.f32 %v101_v6, %v79_v7 }
  0xcb   :  { %v118_v9 = vpop.f32.mrf.mxu0 }
  0xcc   :  { %v107_v10 = vpack.c.bf16 %v80_v8, %v80_v8 }
  0xcd   :  { %v82_v11 = vpop.f32.mrf.mxu0 }
  0xce   :  { %95 = vst.msk [vmem:[%s170_s3] sm:$0xf] %vm94_vm2, %v107_v10  ;;  %v83_v12 = vadd.f32 %v101_v6, %v82_v11 }
  0xcf   :  { %v119_v13 = vpop.f32.mrf.mxu0 }
  0xd0   :  { %v108_v14 = vpack.c.bf16 %v83_v12, %v83_v12 }
  0xd2   :  { %96 = vst.msk [vmem:[%s170_s3 + $0x4] sm:$0xf] %vm94_vm2, %v108_v14 }

// kernel: transformer_nmt_forward.49
= control target key start
LH: loop header
LB: loop body
LE: loop exit
PB: predicated region body
PF: predicated region fallthrough
CT: control target
= control target key end

     0   :  { %v149_v1 = vmov 0.0   ;;  %vm150_vm0 = vmmov 0   ;;  %s192_s0 = inlined_call_operand.vmem [shape: f32[16,32], index: 0, kind: input, shape index: {}]   ;;  %s193_s1 = inlined_call_operand.vmem [shape: bf16[32,128], index: 1, kind: input, shape index: {}]   ;;  %s194_s2 = inlined_call_operand.vmem [shape: f32[1,128], index: 2, kind: input, shape index: {}]   ;;  %s195_s3 = inlined_call_operand.hbm [shape: f32[16,128], index: 3, kind: output, shape index: {}]  }
   0x1   :  { %v125_v0 = vld [vmem:[%s193_s1 + $0x8] sm:$0xff]   ;;  %112 = vmatprep.subr.bf16.mxu0 %v149_v1  ;;  %v126_v2 = vld [vmem:[%s193_s1] sm:$0xff]   ;;  %116 = vmatprep.mubr.msk.bf16.mxu0 %vm150_vm0, %v149_v1 }
   0x2   :  { %113 = vmatpush3.bf16.msra.mxu0 %v125_v0  ;;  %v16_v3 = vld [vmem:[%s192_s0] sm:$0xff]  ;;  %v17_v4 = vld [vmem:[%s192_s0 + $0x8] sm:$0xff] }
   0x3   :  { %114 = vmatprep.subr.bf16.mxu0 %v149_v1 }
   0x4   :  { %8 = vsyncpa [#allocation3], 0  ;;  %v18_v5 = vpack.c.bf16 %v17_v4, %v16_v3  ;;  %vm42_vm1 = vcmask 261120   ;;  %v105_v6 = vld [vmem:[%s194_s2] ss:$0 sm:$0xff]  ;;  %s151_s1 = smov [#allocation2]  }
   0x5   :  { %s94_s22 = sshll.u32 %s151_s1, 4  ;;  %s95_s22 = int_to_ptr.vmem [resolvable:$true] %s94_s22 }
   0x6   :  { %115 = vmatpush3.bf16.msra.mxu0 %v126_v2  ;;  %s127_s0 = scalar_lea.vmem %s95_s22, 256  ;;  %p132_p1 = scmp.lt.s32.totalorder %s95_s22, %s95_s22 }
   0x7   :  { %p128_p0 = scmp.ne.s32.totalorder %s95_s22, %s127_s0  ;;  %p133_p2 = scmp.lt.s32.totalorder %s127_s0, %s127_s0 }
   0x9   :  { %117 = vmatmul.mubr.msk.bf16.vlgmr.msra.gmra.mxu0 %vm42_vm1, %v18_v5  ;;  %p134_p3 = por %p133_p2, %p132_p1 }
   0xb   :  { %p135_p4 = pnand %p134_p3, %p128_p0 }
  0xc9   :  { %v80_v7 = vpop.f32.mrf.mxu0 }
  0xca   :  { %v81_v8 = vadd.f32 %v105_v6, %v80_v7 }
  0xcb   :  { %v118_v9 = vpop.f32.mrf.mxu0 }
  0xcc   :  { %87 = vst [vmem:[#allocation2] sm:$0xff] %v81_v8 }
  0xcd   :  { %v83_v10 = vpop.f32.mrf.mxu0 }
  0xce   :  { %v84_v11 = vadd.f32 %v105_v6, %v83_v10 }
  0xcf   :  { %v119_v12 = vpop.f32.mrf.mxu0 }
  0xd0   :  { %88 = vst [vmem:[#allocation2 + $0x8] sm:$0xff] %v84_v11 }
  0xd1   :  { %138 = shalt.err (!%p135_p4)
}
  0xd2   :  { %s152_s23 = smov 128   ;;  %s153_s2 = smov 8  }
  0xd3   :  { %100 = dma.vmem_to_hbm [thread:$0]  %s95_s22, 256, %s195_s3, [#allocation3], %s152_s23, %s152_s23, %s153_s2  }
  0xd4   :  { %147 = dma.done.wait [#allocation3], 256  }
  0xd5   :  { %148 = vsyncadd [#allocation3], 4294967040 }
  0xd6   :  { %104 = vsyncpa [#allocation3], 1 }

// kernel: transformer_nmt_forward.34
= control target key start
LH: loop header
LB: loop body
LE: loop exit
PB: predicated region body
PF: predicated region fallthrough
CT: control target
= control target key end

     0   :  { %s962_s9 = smov 0   ;;  %s964_s10 = smov 0   ;;  %s1073_s0 = inlined_call_operand.vmem [shape: bf16[2,8,32], index: 0, kind: input, shape index: {}]   ;;  %s1074_s1 = inlined_call_operand.vmem [shape: bf16[2,8,64], index: 1, kind: input, shape index: {}]   ;;  %s1075_s2 = inlined_call_operand.vmem [shape: bf16[2,8,32], index: 2, kind: output, shape index: {}]  }
   0x1   :  { %s966_s11 = smov 0  }
   0x2 LB: > { %s24_s12 = sadd.s32 1, %s929_s10  ;;  %p771_p0 = scmp.ge.s32.totalorder %s933_s11, 1  ;;  %s933_s11 = sphi %s966_s11, %s12_s11   ;;  %s929_s10 = sphi %s964_s10, %s1077_s10   ;;  %s925_s9 = sphi %s962_s9, %s1076_s9  }
   0x3   : > { %p26_p1 = scmp.ge.s32.totalorder %s24_s12, 2  ;;  %p139_p2 = scmp.lt.s32.totalorder %s933_s11, 3 }
   0x5   : > { %s1079_s12 = smov (%p26_p1, %s24_s12), 0  ;;  %p140_p3 = pnand %p771_p0, %p139_p2 }
   0x6   : > { %p169_p4 = scmp.lt.s32.totalorder (!%p140_p3), %s925_s9, 1  ;;  %s937_s20 = smov (!%p140_p3), 96  }
   0x7   : > { %143 = sbr.rel (%p140_p3) target bundleno = 1381 (0x565), region = 28  ;;  %s938_s21 = smov (!%p140_p3), 120  }
   0x8   : > { %s939_s22 = smov (!%p140_p3), 112   ;;  %s940_s23 = smov (!%p140_p3), 104  }
   0x9   : > { %s941_s27 = smov (!%p140_p3), 88   ;;  %s942_s28 = smov (!%p140_p3), 72  }
   0xa   : > { %s943_s29 = smov (!%p140_p3), 80   ;;  %s944_s30 = smov (!%p140_p3), 8  }
   0xb   : > { %s945_s3 = smov (!%p140_p3), 16   ;;  %s946_s4 = smov (!%p140_p3), 24  }
   0xc   : > { %v935_v0 = vmov 0.0   ;;  %vm936_vm0 = vmmov 0   ;;  %s1081_s9 = smov (!%p169_p4, %s925_s9), 1  ;;  %vm199_vm1 = vcmask 64512   ;;  %v191_v4 = vlaneseq }
   0xd   : > { %809 = vmatprep.subr.bf16.mxu0 %v935_v0  ;;  %811 = vmatprep.mubr.msk.bf16.mxu0 %vm936_vm0, %v935_v0  ;;  %s986_s13 = sshll.u32 %s1081_s9, 2  ;;  %vm268_vm3 = vcmask 1043456   ;;  %vm313_vm4 = vcmask 60416   ;;  %vm437_vm5 = vcmask 126016   ;;  %vm558_vm6 = vcmask 191616  }
   0xe   : > { %815 = vmatprep.subr.bf16.mxu1 %v935_v0  ;;  %817 = vmatprep.mubr.msk.bf16.mxu1 %vm936_vm0, %v935_v0  ;;  %s179_s16 = scalar_lea.vmem %s1074_s1, %s986_s13  ;;  %s175_s19 = scalar_lea.vmem %s1073_s0, %s986_s13  ;;  %v192_v5 = vshrl.u32 %v191_v4, 7  ;;  %v196_v6 = vand.u32 127, %v191_v4  ;;  %vm679_vm7 = vcmask 257216  }
   0xf   : > { %v189_v1 = vld [vmem:[%s179_s16] sm:$0xf]  ;;  %s1034_s26 = scalar_lea.vmem %s1075_s2, %s986_s13 }
  0x10   : > { %v204_v2 = vsel %vm199_vm1, %v189_v1, 0  ;;  %v188_v3 = vld [vmem:[%s175_s19] sm:$0xf]  ;;  %vm197_vm2 = vcmp.gt.s32.totalorder %v196_v6, %v192_v5  ;;  %v1006_v15 = vcombine.low %v189_v1, %v189_v1 }
  0x11   : > { %810 = vmatpush3.bf16.xpose.msra.mxu0 %v204_v2  ;;  %v1002_v8 = vsel %vm197_vm2, -1e+09, %v935_v0  ;;  %v778_v16 = vcombine.low %v188_v3, %v188_v3 }
  0x12   : > { %827 = vmatprep.subr.bf16.mxu0 %v935_v0  ;;  %263 = vrot.lane.b32.xlu1 %v1006_v15, %s937_s20 }
  0x16   : > { %320 = vrot.lane.b32.xlu1 %v1006_v15, %s938_s21 }
  0x18   : > { %812 = vmatmul.mubr.msk.bf16.vlgmr.msra.gmra.mxu0 %vm199_vm1, %v188_v3 }
  0x19   : > { %829 = vmatprep.mubr.msk.bf16.mxu0 %vm936_vm0, %v935_v0 }
  0x1a   : > { %441 = vrot.lane.b32.xlu1 %v1006_v15, %s939_s22 }
  0x1e   : > { %439 = vrot.lane.b32.xlu1 %v778_v16, %s939_s22 }
  0x22   : > { %562 = vrot.lane.b32.xlu1 %v1006_v15, %s940_s23 }
  0x26   : > { %560 = vrot.lane.b32.xlu1 %v778_v16, %s940_s23 }
  0x84   : > { %v264_v22 = vpop.permute.xlu1 %263 }
  0x85   : > { %v270_v23 = vsel %vm268_vm3, %v264_v22, 0 }
  0x86   : > { %816 = vmatpush3.bf16.msra.mxu1 %v270_v23 }
  0x87   : > { %821 = vmatprep.subr.bf16.mxu1 %v935_v0 }
  0x88   : > { %v321_v26 = vpop.permute.xlu1 %320 }
  0x89   : > { %v326_v28 = vsel %vm199_vm1, %v321_v26, 0 }
  0x8c   : > { %v442_v30 = vpop.permute.xlu1 %441 }
  0x8d   : > { %v447_v33 = vsel %vm199_vm1, %v442_v30, 0 }
  0x90   : > { %v440_v32 = vpop.permute.xlu1 %439 }
  0x94   : > { %v563_v34 = vpop.permute.xlu1 %562 }
  0x95   : > { %v568_v35 = vsel %vm199_vm1, %v563_v34, 0 }
  0x98   : > { %v561_v36 = vpop.permute.xlu1 %560 }
  0xd8   : > { %v240_v7 = vpop.f32.mrf.mxu0 }
  0xd9   : > { %v246_v9 = vmul.f32 0.35355338, %v240_v7 }
  0xda   : > { %v813_v10 = vpop.f32.mrf.mxu0 }
  0xdb   : > { %v247_v11 = vadd.f32 %v246_v9, %v1002_v8 }
  0xdc   : > { %v243_v12 = vpop.f32.mrf.mxu0 }
  0xdd   : > { %v248_v13 = vsel %vm199_vm1, %v247_v11, -inf }
  0xde   : > { %249 = vmax.xlane.f32.xlu0 %v248_v13  ;;  %v814_v14 = vpop.f32.mrf.mxu0 }
 0x167   : > { %v250_v17 = vpop.xlane.xlu0 %249 }
 0x168   : > { %v251_v18 = vsub.f32 %v247_v11, %v250_v17 }
 0x16a   : > { %v252_v19 = vmul.f32 1.442695, %v251_v18 }
 0x16c   : > { %895 = vpow2.f32 %v252_v19 }
 0x179   : > { %v896_v20 = vpop.eup %895 }
 0x17a   : > { %v254_v21 = vsel %vm199_vm1, %v896_v20, 0.0 }
 0x17b   : > { %255 = vadd.xlane.f32.xlu0 %v254_v21 }
 0x191   : > { %318 = vrot.lane.b32.xlu0 %v778_v16, %s938_s21 }
 0x204   : > { %v256_v24 = vpop.xlane.xlu0 %255 }
 0x205   : > { %897 = vrcp.f32 %v256_v24 }
 0x208   : > { %v319_v31 = vpop.permute.xlu0 %318 }
 0x212   : > { %v898_v25 = vpop.eup %897 }
 0x213   : > { %v258_v27 = vmul.f32 %v898_v25, %v896_v20 }
 0x215   : > { %v259_v29 = vpack.c.bf16 %v258_v27, %v258_v27 }
 0x217   : > { %818 = vmatmul.mubr.msk.bf16.vlgmr.msra.gmra.mxu1 %vm199_vm1, %v259_v29 }
 0x218   : > { %822 = vmatpush3.bf16.xpose.msra.mxu1 %v326_v28  ;;  %823 = vmatprep.mubr.msk.bf16.mxu1 %vm936_vm0, %v935_v0 }
 0x219   : > { %833 = vmatprep.subr.bf16.mxu1 %v935_v0 }
 0x21f   : > { %824 = vmatmul.mubr.msk.bf16.vlgmr.msra.gmra.mxu1 %vm199_vm1, %v319_v31 }
 0x220   : > { %834 = vmatpush3.bf16.xpose.msra.mxu1 %v447_v33  ;;  %835 = vmatprep.mubr.msk.bf16.mxu1 %vm936_vm0, %v935_v0 }
 0x221   : > { %845 = vmatprep.subr.bf16.mxu1 %v935_v0 }
 0x227   : > { %836 = vmatmul.mubr.msk.bf16.vlgmr.msra.gmra.mxu1 %vm199_vm1, %v440_v32 }
 0x228   : > { %846 = vmatpush3.bf16.xpose.msra.mxu1 %v568_v35  ;;  %847 = vmatprep.mubr.msk.bf16.mxu1 %vm936_vm0, %v935_v0 }
 0x22f   : > { %848 = vmatmul.mubr.msk.bf16.vlgmr.msra.gmra.mxu1 %vm199_vm1, %v561_v36 }
 0x2d7   : > { %v306_v37 = vpop.f32.mrf.mxu1 }
 0x2d8   : > { %v312_v38 = vpack.c.bf16 %v306_v37, %v306_v37 }
 0x2d9   : > { %v819_v39 = vpop.f32.mrf.mxu1 }
 0x2da   : > { %314 = vst.msk [vmem:[%s1034_s26] sm:$0xf] %vm313_vm4, %v312_v38 }
 0x2db   : > { %v309_v40 = vpop.f32.mrf.mxu1 }
 0x2dd   : > { %v820_v41 = vpop.f32.mrf.mxu1 }
 0x2df   : > { %v362_v42 = vpop.f32.mrf.mxu1 }
 0x2e0   : > { %v368_v43 = vmul.f32 0.35355338, %v362_v42 }
 0x2e1   : > { %v825_v44 = vpop.f32.mrf.mxu1 }
 0x2e2   : > { %v369_v45 = vadd.f32 %v368_v43, %v1002_v8 }
 0x2e3   : > { %v365_v46 = vpop.f32.mrf.mxu1 }
 0x2e4   : > { %v370_v47 = vsel %vm199_vm1, %v369_v45, -inf }
 0x2e5   : > { %371 = vmax.xlane.f32.xlu1 %v370_v47  ;;  %v826_v48 = vpop.f32.mrf.mxu1 }
 0x2e7   : > { %v483_v49 = vpop.f32.mrf.mxu1 }
 0x2e8   : > { %v489_v50 = vmul.f32 0.35355338, %v483_v49 }
 0x2e9   : > { %v837_v51 = vpop.f32.mrf.mxu1 }
 0x2ea   : > { %v490_v52 = vadd.f32 %v489_v50, %v1002_v8 }
 0x2eb   : > { %v486_v53 = vpop.f32.mrf.mxu1 }
 0x2ec   : > { %v491_v54 = vsel %vm199_vm1, %v490_v52, -inf }
 0x2ed   : > { %492 = vmax.xlane.f32.xlu0 %v491_v54  ;;  %v838_v55 = vpop.f32.mrf.mxu1 }
 0x2ef   : > { %v604_v56 = vpop.f32.mrf.mxu1 }
 0x2f0   : > { %v610_v57 = vmul.f32 0.35355338, %v604_v56 }
 0x2f1   : > { %v849_v58 = vpop.f32.mrf.mxu1 }
 0x2f2   : > { %v611_v59 = vadd.f32 %v610_v57, %v1002_v8 }
 0x2f3   : > { %v607_v60 = vpop.f32.mrf.mxu1 }
 0x2f4   : > { %v612_v61 = vsel %vm199_vm1, %v611_v59, -inf }
 0x2f5   : > { %613 = vmax.xlane.f32.xlu1 %v612_v61  ;;  %v850_v62 = vpop.f32.mrf.mxu1 }
 0x306   : > { %382 = vrot.lane.b32.xlu1 %v1006_v15, %s941_s27 }
 0x36e   : > { %v372_v63 = vpop.xlane.xlu1 %371 }
 0x36f   : > { %v373_v1 = vsub.f32 %v369_v45, %v372_v63 }
 0x371   : > { %v374_v2 = vmul.f32 1.442695, %v373_v1 }
 0x373   : > { %899 = vpow2.f32 %v374_v2 }
 0x376   : > { %v493_v3 = vpop.xlane.xlu0 %492 }
 0x377   : > { %v494_v4 = vsub.f32 %v490_v52, %v493_v3 }
 0x379   : > { %v495_v5 = vmul.f32 1.442695, %v494_v4 }
 0x37b   : > { %901 = vpow2.f32 %v495_v5 }
 0x37e   : > { %v614_v6 = vpop.xlane.xlu1 %613 }
 0x37f   : > { %v615_v7 = vsub.f32 %v611_v59, %v614_v6 }
 0x380   : > { %v900_v9 = vpop.eup %899 }
 0x381   : > { %v616_v8 = vmul.f32 1.442695, %v615_v7  ;;  %v376_v10 = vsel %vm199_vm1, %v900_v9, 0.0 }
 0x382   : > { %377 = vadd.xlane.f32.xlu0 %v376_v10  ;;  %v383_v11 = vpop.permute.xlu1 %382 }
 0x383   : > { %903 = vpow2.f32 %v616_v8  ;;  %v388_v12 = vsel %vm268_vm3, %v383_v11, 0 }
 0x384   : > { %828 = vmatpush3.bf16.msra.mxu0 %v388_v12 }
 0x385   : > { %839 = vmatprep.subr.bf16.mxu0 %v935_v0 }
 0x388   : > { %v902_v13 = vpop.eup %901 }
 0x389   : > { %v497_v14 = vsel %vm199_vm1, %v902_v13, 0.0 }
 0x38a   : > { %498 = vadd.xlane.f32.xlu1 %v497_v14 }
 0x390   : > { %v904_v16 = vpop.eup %903 }
 0x391   : > { %v618_v17 = vsel %vm199_vm1, %v904_v16, 0.0 }
 0x392   : > { %619 = vadd.xlane.f32.xlu0 %v618_v17 }
 0x39b   : > { %624 = vrot.lane.b32.xlu1 %v1006_v15, %s942_s28 }
 0x3a8   : > { %503 = vrot.lane.b32.xlu0 %v1006_v15, %s943_s29 }
 0x40b   : > { %v378_v18 = vpop.xlane.xlu0 %377 }
 0x40c   : > { %905 = vrcp.f32 %v378_v18 }
 0x413   : > { %v499_v19 = vpop.xlane.xlu1 %498 }
 0x414   : > { %907 = vrcp.f32 %v499_v19 }
 0x417   : > { %v625_v15 = vpop.permute.xlu1 %624 }
 0x418   : > { %v630_v29 = vsel %vm268_vm3, %v625_v15, 0 }
 0x419   : > { %v906_v20 = vpop.eup %905 }
 0x41a   : > { %v380_v21 = vmul.f32 %v906_v20, %v900_v9 }
 0x41b   : > { %v620_v22 = vpop.xlane.xlu0 %619 }
 0x41c   : > { %909 = vrcp.f32 %v620_v22  ;;  %v381_v23 = vpack.c.bf16 %v380_v21, %v380_v21 }
 0x41e   : > { %830 = vmatmul.mubr.msk.bf16.vlgmr.msra.gmra.mxu0 %vm199_vm1, %v381_v23 }
 0x41f   : > { %v504_v24 = vpop.permute.xlu0 %503  ;;  %841 = vmatprep.mubr.msk.bf16.mxu0 %vm936_vm0, %v935_v0 }
 0x420   : > { %v509_v25 = vsel %vm268_vm3, %v504_v24, 0 }
 0x421   : > { %v908_v26 = vpop.eup %907  ;;  %840 = vmatpush3.bf16.msra.mxu0 %v509_v25 }
 0x422   : > { %v501_v27 = vmul.f32 %v908_v26, %v902_v13  ;;  %851 = vmatprep.subr.bf16.mxu0 %v935_v0 }
 0x424   : > { %v502_v28 = vpack.c.bf16 %v501_v27, %v501_v27 }
 0x426   : > { %842 = vmatmul.mubr.msk.bf16.vlgmr.msra.gmra.mxu0 %vm199_vm1, %v502_v28 }
 0x427   : > { %852 = vmatpush3.bf16.msra.mxu0 %v630_v29  ;;  %853 = vmatprep.mubr.msk.bf16.mxu0 %vm936_vm0, %v935_v0 }
 0x429   : > { %v910_v30 = vpop.eup %909 }
 0x42a   : > { %v622_v31 = vmul.f32 %v910_v30, %v904_v16 }
 0x42c   : > { %v623_v32 = vpack.c.bf16 %v622_v31, %v622_v31 }
 0x42e   : > { %854 = vmatmul.mubr.msk.bf16.vlgmr.msra.gmra.mxu0 %vm199_vm1, %v623_v32 }
 0x4de   : > { %v424_v33 = vpop.f32.mrf.mxu0 }
 0x4df   : > { %v790_v34 = vpack.c.bf16 %v424_v33, %v424_v33 }
 0x4e0   : > { %v831_v35 = vpop.f32.mrf.mxu0 }
 0x4e1   : > { %434 = vrot.lane.b32.xlu1 %v790_v34, %s944_s30 }
 0x4e2   : > { %v427_v36 = vpop.f32.mrf.mxu0 }
 0x4e4   : > { %v832_v37 = vpop.f32.mrf.mxu0 }
 0x4e6   : > { %v545_v38 = vpop.f32.mrf.mxu0 }
 0x4e7   : > { %v791_v39 = vpack.c.bf16 %v545_v38, %v545_v38 }
 0x4e8   : > { %v843_v40 = vpop.f32.mrf.mxu0 }
 0x4e9   : > { %555 = vrot.lane.b32.xlu0 %v791_v39, %s945_s3 }
 0x4ea   : > { %v548_v0 = vpop.f32.mrf.mxu0 }
 0x4ec   : > { %v844_v41 = vpop.f32.mrf.mxu0 }
 0x4ee   : > { %v666_v42 = vpop.f32.mrf.mxu0 }
 0x4ef   : > { %v792_v43 = vpack.c.bf16 %v666_v42, %v666_v42 }
 0x4f0   : > { %v855_v44 = vpop.f32.mrf.mxu0 }
 0x4f1   : > { %676 = vrot.lane.b32.xlu1 %v792_v43, %s946_s4 }
 0x4f2   : > { %v669_v45 = vpop.f32.mrf.mxu0 }
 0x4f4   : > { %v856_v46 = vpop.f32.mrf.mxu0 }
 0x553   : > { %v435_v47 = vpop.permute.xlu1 %434 }
 0x554   : > { %438 = vst.msk [vmem:[%s1034_s26] sm:$0xf] %vm437_vm5, %v435_v47 }
 0x55b   : > { %v556_v48 = vpop.permute.xlu0 %555 }
 0x55c   : > { %559 = vst.msk [vmem:[%s1034_s26] sm:$0xf] %vm558_vm6, %v556_v48 }
 0x563   : > { %v677_v49 = vpop.permute.xlu1 %676 }
 0x564   : > { %680 = vst.msk [vmem:[%s1034_s26] sm:$0xf] %vm679_vm7, %v677_v49 }
 0x565 PF: > { %s12_s11 = sadd.s32 1, %s933_s11   ;;  %s1076_s9 = smov %s929_s10 }
 0x566   : > { %p9_p5 = scmp.ge.s32.totalorder %s12_s11, 4   ;;  %s1077_s10 = smov %s1079_s12 }
 0x568   :  { %11 = sbr.rel (!%p9_p5) target bundleno = 2 (0x2), region = 61 }

</bundles_post_ra>
